<compile_context>
chip_gen: v5e
topology: v5e:2x2
jax: 0.10.0
libtpu: 0.0.40
codegen_flags: <defaults>
</compile_context>

<pallas_src>
import jax
import jax.numpy as jnp
import numpy as np
from jax.experimental import pallas as pl
from jax.experimental.pallas import tpu as pltpu

HID = 32           # width of each MLP
FUSED = 2 * HID    # both MLPs stacked block-diagonally


def _atan2(y, x):
    """Elementwise atan2 from VPU/EUP-friendly ops (minimax atan polynomial)."""
    ax = jnp.abs(x)
    ay = jnp.abs(y)
    mx = jnp.maximum(ax, ay)
    mn = jnp.minimum(ax, ay)
    # approx reciprocal issues on the EUP slot and co-issues with the poly.
    a = mn * pl.reciprocal(jnp.where(mx == 0.0, 1.0, mx), approx=True)
    s = a * a
    r = -0.0117212 * s + 0.05265332
    r = r * s - 0.11643287
    r = r * s + 0.19354346
    r = r * s - 0.33262348
    r = r * s + 0.99997726
    r = r * a
    r = jnp.where(ay > ax, (jnp.pi / 2) - r, r)
    r = jnp.where(x < 0.0, jnp.pi - r, r)
    r = jnp.where(y < 0.0, -r, r)
    return r


def edge_update_kernel(edge_ref, wf_ref, wh_ref, bh_ref, wl_ref, bl_ref, out_ref):
    edges = edge_ref[...]            # (8, te) f32: [fj, fi, degree, dx, dy, 0, 0, 0]
    wf = wf_ref[...]                 # (64, 8)     bf16 fused first layer (+bias col 5)
    wh = wh_ref[...]                 # (3, 64, 64) bf16 block-diagonal hidden layers
    bh = bh_ref[...]                 # (3, 64, 1)  f32 hidden biases
    wl = wl_ref[...]                 # (8, 64)     bf16 fused last layer (row 7 zero)
    bl = bl_ref[...]                 # (8, 1)      f32 last bias (row 7 zero)

    fj = edges[0:1, :]
    fi = edges[1:2, :]
    degree = edges[2:3, :]
    dx = edges[3:4, :]
    dy = edges[4:5, :]

    angle = _atan2(dy, dx)                       # (1, te)
    dist2 = dx * dx + dy * dy
    distance = jnp.sqrt(dist2)                   # (1, te)
    scale = (fj - fi) / dist2                    # exact f32 divide for the dd path
    ddx = scale * dx
    ddy = scale * dy
    dd = jnp.concatenate([ddx, ddy], axis=0)     # (2, te)

    ones = jnp.ones_like(degree)
    zeros = jnp.zeros_like(degree)
    feats = jnp.concatenate(
        [degree, angle, distance, ddx, ddy, ones, zeros, zeros], axis=0)  # (8, te)

    relu = lambda t: jnp.maximum(t, 0.0)

    def dense(w_bf16, x, b=None):
        # (out, K) @ (K, te) on the MXU; bf16 operands, f32 accumulate.
        y = jnp.dot(w_bf16, x.astype(jnp.bfloat16),
                    preferred_element_type=jnp.float32)
        return y if b is None else y + b

    # Fused first layer on the MXU (biases folded into the 'ones' column).
    h = relu(dense(wf, feats))                   # (64, te)
    # Three fused (block-diagonal) hidden layers.
    for j in range(3):
        h = relu(dense(wh[j], h, bh[j]))         # (64, te)
    # Fused last layer: rows 0-1 = weight_mlp out, rows 2-6 = mlp out, row 7 = 0.
    fused = dense(wl, h, bl)                     # (8, te)

    # Single full-vreg (8, te) unmasked store.
    out_ref[...] = jnp.concatenate([fused[0:2, :] * dd, fused[2:8, :]], axis=0)


def _pack_params(params):
    """Pack the 20 (W, b) arrays into 5 fused, kernel-resident arrays."""
    wm, mm = params
    (W0, b0), (W1, b1), (W2, b2), (W3, b3), (W4, b4) = wm
    (V0, c0), (V1, c1), (V2, c2), (V3, c3), (V4, c4) = mm
    f32, bf16 = jnp.float32, jnp.bfloat16

    # Fused first layer (64, 8): columns 0-4 = features, column 5 = bias ('ones').
    w_first = jnp.zeros((FUSED, 8), f32)
    w_first = w_first.at[:HID, 0:3].set(W0.T)
    w_first = w_first.at[:HID, 5].set(b0[0])
    w_first = w_first.at[HID:, 0:5].set(V0.T)
    w_first = w_first.at[HID:, 5].set(c0[0])
    w_first = w_first.astype(bf16)

    # Three block-diagonal hidden layers (3, 64, 64), pre-cast to bf16.
    def blockdiag(A, B):
        Z = jnp.zeros((HID, HID), f32)
        top = jnp.concatenate([A.T, Z], axis=1)
        bot = jnp.concatenate([Z, B.T], axis=1)
        return jnp.concatenate([top, bot], axis=0)

    w_hidden = jnp.stack([blockdiag(W1, V1), blockdiag(W2, V2),
                          blockdiag(W3, V3)], axis=0).astype(bf16)      # (3, 64, 64)
    b_hidden = jnp.stack([jnp.concatenate([b1[0], c1[0]]),
                          jnp.concatenate([b2[0], c2[0]]),
                          jnp.concatenate([b3[0], c3[0]])],
                         axis=0)[..., None].astype(f32)                 # (3, 64, 1)

    # Fused last layer (8, 64): rows 0-1 = W4^T block, rows 2-6 = V4^T block, 7 = 0.
    w_last = jnp.zeros((8, FUSED), f32)
    w_last = w_last.at[0:2, :HID].set(W4.T)
    w_last = w_last.at[2:7, HID:].set(V4.T)
    w_last = w_last.astype(bf16)
    b_last = jnp.concatenate([b4[0], c4[0],
                              jnp.zeros((1,), f32)])[:, None].astype(f32)  # (8, 1)

    return w_first, w_hidden, b_hidden, w_last, b_last


def edge_update(src, dest, edge_attr, u, batch, params, *, te=512,
                feature_major=False):
    del u, batch  # unused by the PyTorch forward as well
    E = src.shape[0]
    te = min(te, E)
    assert E % te == 0, "E must be a multiple of the edge tile size (pad host-side)"

    wf, wh, bh, wl, bl = _pack_params(params)

    f32 = jnp.float32
    zero = jnp.zeros((E,), f32)
    # One feature-major (8, E) edge array -> one full-tile DMA per grid step.
    edge_pack = jnp.stack([src[:, 0].astype(f32), dest[:, 0].astype(f32),
                           dest[:, 1].astype(f32), edge_attr[:, 0].astype(f32),
                           edge_attr[:, 1].astype(f32), zero, zero, zero], axis=0)

    out8 = pl.pallas_call(
        edge_update_kernel,
        out_shape=jax.ShapeDtypeStruct((8, E), jnp.float32),
        grid=(E // te,),
        in_specs=[pl.BlockSpec((8, te), lambda i: (0, i)),
                  pl.BlockSpec((FUSED, 8), lambda i: (0, 0)),
                  pl.BlockSpec((3, FUSED, FUSED), lambda i: (0, 0, 0)),
                  pl.BlockSpec((3, FUSED, 1), lambda i: (0, 0, 0)),
                  pl.BlockSpec((8, FUSED), lambda i: (0, 0)),
                  pl.BlockSpec((8, 1), lambda i: (0, 0))],
        out_specs=pl.BlockSpec((8, te), lambda i: (0, i)),
        compiler_params=pltpu.CompilerParams(
            dimension_semantics=("parallel",),
            vmem_limit_bytes=32 * 1024 * 1024),
    )(edge_pack, wf, wh, bh, wl, bl)

    if feature_major:
        return out8  # rows 0-6 are the PyTorch output columns; row 7 is padding
    # TODO(synk): this transpose is an extra XLA HBM round trip; consumers that can
    #             take feature-major output should use feature_major=True instead.
    return out8[:7].T


def edge_update_ref(src, dest, edge_attr, params):
    """Pure-JAX reference mirroring the PyTorch forward (float32)."""
    fj, fi = src[:, 0:1], dest[:, 0:1]
    degree = dest[:, 1:2]
    dx, dy = edge_attr[:, 0:1], edge_attr[:, 1:2]
    angle = jnp.arctan2(dy, dx)
    distance = jnp.linalg.norm(edge_attr, axis=1, keepdims=True)
    dd = (fj - fi) / distance ** 2 * edge_attr

    def run_mlp(x, layers):
        for i, (W, b) in enumerate(layers):
            x = jnp.dot(x, W, preferred_element_type=jnp.float32) + b[0]
            if i < len(layers) - 1:
                x = jnp.maximum(x, 0.0)
        return x

    wm, mm = params
    weights = run_mlp(jnp.concatenate([degree, angle, distance], 1), wm)
    hidden = run_mlp(jnp.concatenate([degree, angle, distance, dd], 1), mm)
    return jnp.concatenate([dd * weights, hidden], 1)


def init_params(key):
    """Deterministic synthetic init (PyTorch-default-style uniform)."""
    def linear(k, fan_in, fan_out):
        k1, k2 = jax.random.split(k)
        bound = 1.0 / np.sqrt(fan_in)
        W = jax.random.uniform(k1, (fan_in, fan_out), jnp.float32, -bound, bound)
        b = jax.random.uniform(k2, (1, fan_out), jnp.float32, -bound, bound)
        return W, b

    dims_w = [(3, HID), (HID, HID), (HID, HID), (HID, HID), (HID, 2)]
    dims_m = [(5, HID), (HID, HID), (HID, HID), (HID, HID), (HID, 5)]
    keys = jax.random.split(key, 10)
    wm = [linear(keys[i], *dims_w[i]) for i in range(5)]
    mm = [linear(keys[5 + i], *dims_m[i]) for i in range(5)]
    return wm, mm


if __name__ == "__main__":
    key = jax.random.PRNGKey(0)
    k_src, k_dest, k_dir, k_norm, k_par = jax.random.split(key, 5)
    E = 1024   # te=512 -> 2 parallel grid steps (both v7x TensorCores get work)

    src = jax.random.normal(k_src, (E, 2), jnp.float32)
    dest = jax.random.normal(k_dest, (E, 2), jnp.float32)
    # edge vectors with norm bounded away from 0 so dd stays well conditioned
    direction = jax.random.normal(k_dir, (E, 2), jnp.float32)
    direction = direction / jnp.linalg.norm(direction, axis=1, keepdims=True)
    radius = 0.5 + jax.random.uniform(k_norm, (E, 1), jnp.float32)
    edge_attr = direction * radius

    u = jnp.zeros((1, 1), jnp.float32)    # unused by forward
    batch = jnp.zeros((E,), jnp.int32)    # unused by forward

    params = init_params(k_par)

    out = jax.block_until_ready(
        edge_update(src, dest, edge_attr, u, batch, params))
    ref = jax.block_until_ready(edge_update_ref(src, dest, edge_attr, params))

    assert out.shape == (E, 7) and out.dtype == jnp.float32
    np.testing.assert_allclose(np.asarray(out), np.asarray(ref),
                               rtol=5e-2, atol=5e-2)
    print("KERNEL_OK")
</pallas_src>

<mosaic_0001>
module attributes {stable_mosaic.version = 11 : i64} {
  func.func @edge_update_kernel(%arg0: i32, %arg1: memref<8x512xf32, #tpu.memory_space<vmem>>, %arg2: memref<64x8xbf16, #tpu.memory_space<vmem>>, %arg3: memref<3x64x64xbf16, #tpu.memory_space<vmem>>, %arg4: memref<3x64x1xf32, #tpu.memory_space<vmem>>, %arg5: memref<8x64xbf16, #tpu.memory_space<vmem>>, %arg6: memref<8x1xf32, #tpu.memory_space<vmem>>, %arg7: memref<8x512xf32, #tpu.memory_space<vmem>>) attributes {dimension_semantics = [#tpu.dimension_semantics<parallel>], iteration_bounds = array<i64: 2>, scalar_prefetch = 0 : i64, scratch_operands = 0 : i64, tpu.core_type = #tpu.core_type<tc>, window_params = [{transform_indices = @transform_0, window_bounds = array<i64: 8, 512>}, {pipeline_mode = #tpu.pipeline_mode<synchronous>, transform_indices = @transform_1, window_bounds = array<i64: 64, 8>}, {pipeline_mode = #tpu.pipeline_mode<synchronous>, transform_indices = @transform_2, window_bounds = array<i64: 3, 64, 64>}, {pipeline_mode = #tpu.pipeline_mode<synchronous>, transform_indices = @transform_3, window_bounds = array<i64: 3, 64, 1>}, {pipeline_mode = #tpu.pipeline_mode<synchronous>, transform_indices = @transform_4, window_bounds = array<i64: 8, 64>}, {pipeline_mode = #tpu.pipeline_mode<synchronous>, transform_indices = @transform_5, window_bounds = array<i64: 8, 1>}, {transform_indices = @transform_6, window_bounds = array<i64: 8, 512>}]} {
    %c0 = arith.constant 0 : index
    %c0_0 = arith.constant 0 : index
    %0 = vector.load %arg1[%c0, %c0_0] : memref<8x512xf32, #tpu.memory_space<vmem>>, vector<8x512xf32>
    %c0_1 = arith.constant 0 : index
    %c0_2 = arith.constant 0 : index
    %1 = vector.load %arg2[%c0_1, %c0_2] : memref<64x8xbf16, #tpu.memory_space<vmem>>, vector<64x8xbf16>
    %c0_3 = arith.constant 0 : index
    %c0_4 = arith.constant 0 : index
    %c0_5 = arith.constant 0 : index
    %2 = vector.load %arg3[%c0_3, %c0_4, %c0_5] : memref<3x64x64xbf16, #tpu.memory_space<vmem>>, vector<3x64x64xbf16>
    %c0_6 = arith.constant 0 : index
    %c0_7 = arith.constant 0 : index
    %c0_8 = arith.constant 0 : index
    %3 = vector.load %arg4[%c0_6, %c0_7, %c0_8] : memref<3x64x1xf32, #tpu.memory_space<vmem>>, vector<3x64x1xf32>
    %c0_9 = arith.constant 0 : index
    %c0_10 = arith.constant 0 : index
    %4 = vector.load %arg5[%c0_9, %c0_10] : memref<8x64xbf16, #tpu.memory_space<vmem>>, vector<8x64xbf16>
    %c0_11 = arith.constant 0 : index
    %c0_12 = arith.constant 0 : index
    %5 = vector.load %arg6[%c0_11, %c0_12] : memref<8x1xf32, #tpu.memory_space<vmem>>, vector<8x1xf32>
    %6 = vector.extract_strided_slice %0 {offsets = [0, 0], sizes = [1, 512], strides = [1, 1]} : vector<8x512xf32> to vector<1x512xf32>
    %7 = vector.extract_strided_slice %0 {offsets = [1, 0], sizes = [1, 512], strides = [1, 1]} : vector<8x512xf32> to vector<1x512xf32>
    %8 = vector.extract_strided_slice %0 {offsets = [2, 0], sizes = [1, 512], strides = [1, 1]} : vector<8x512xf32> to vector<1x512xf32>
    %9 = vector.extract_strided_slice %0 {offsets = [3, 0], sizes = [1, 512], strides = [1, 1]} : vector<8x512xf32> to vector<1x512xf32>
    %10 = vector.extract_strided_slice %0 {offsets = [4, 0], sizes = [1, 512], strides = [1, 1]} : vector<8x512xf32> to vector<1x512xf32>
    %11 = math.absf %9 : vector<1x512xf32>
    %12 = math.absf %10 : vector<1x512xf32>
    %13 = arith.maximumf %11, %12 : vector<1x512xf32>
    %14 = arith.minimumf %11, %12 : vector<1x512xf32>
    %cst = arith.constant 0.000000e+00 : f32
    %15 = vector.broadcast %cst : f32 to vector<1x512xf32>
    %16 = arith.cmpf oeq, %13, %15 : vector<1x512xf32>
    %cst_13 = arith.constant 1.000000e+00 : f32
    %17 = vector.broadcast %cst_13 : f32 to vector<1x512xf32>
    %18 = arith.select %16, %17, %13 : vector<1x512xi1>, vector<1x512xf32>
    %19 = tpu.reciprocal %18 {approx = true} : vector<1x512xf32> -> vector<1x512xf32>
    %20 = arith.mulf %14, %19 : vector<1x512xf32>
    %21 = arith.mulf %20, %20 : vector<1x512xf32>
    %cst_14 = arith.constant -1.172120e-02 : f32
    %22 = vector.broadcast %cst_14 : f32 to vector<1x512xf32>
    %23 = arith.mulf %22, %21 : vector<1x512xf32>
    %cst_15 = arith.constant 0.0526533201 : f32
    %24 = vector.broadcast %cst_15 : f32 to vector<1x512xf32>
    %25 = arith.addf %23, %24 : vector<1x512xf32>
    %26 = arith.mulf %25, %21 : vector<1x512xf32>
    %cst_16 = arith.constant 0.116432868 : f32
    %27 = vector.broadcast %cst_16 : f32 to vector<1x512xf32>
    %28 = arith.subf %26, %27 : vector<1x512xf32>
    %29 = arith.mulf %28, %21 : vector<1x512xf32>
    %cst_17 = arith.constant 0.193543464 : f32
    %30 = vector.broadcast %cst_17 : f32 to vector<1x512xf32>
    %31 = arith.addf %29, %30 : vector<1x512xf32>
    %32 = arith.mulf %31, %21 : vector<1x512xf32>
    %cst_18 = arith.constant 0.332623482 : f32
    %33 = vector.broadcast %cst_18 : f32 to vector<1x512xf32>
    %34 = arith.subf %32, %33 : vector<1x512xf32>
    %35 = arith.mulf %34, %21 : vector<1x512xf32>
    %cst_19 = arith.constant 0.999977231 : f32
    %36 = vector.broadcast %cst_19 : f32 to vector<1x512xf32>
    %37 = arith.addf %35, %36 : vector<1x512xf32>
    %38 = arith.mulf %37, %20 : vector<1x512xf32>
    %39 = arith.cmpf ogt, %12, %11 : vector<1x512xf32>
    %cst_20 = arith.constant 1.57079637 : f32
    %40 = vector.broadcast %cst_20 : f32 to vector<1x512xf32>
    %41 = arith.subf %40, %38 : vector<1x512xf32>
    %42 = arith.select %39, %41, %38 : vector<1x512xi1>, vector<1x512xf32>
    %cst_21 = arith.constant 0.000000e+00 : f32
    %43 = vector.broadcast %cst_21 : f32 to vector<1x512xf32>
    %44 = arith.cmpf olt, %9, %43 : vector<1x512xf32>
    %cst_22 = arith.constant 3.14159274 : f32
    %45 = vector.broadcast %cst_22 : f32 to vector<1x512xf32>
    %46 = arith.subf %45, %42 : vector<1x512xf32>
    %47 = arith.select %44, %46, %42 : vector<1x512xi1>, vector<1x512xf32>
    %cst_23 = arith.constant 0.000000e+00 : f32
    %48 = vector.broadcast %cst_23 : f32 to vector<1x512xf32>
    %49 = arith.cmpf olt, %10, %48 : vector<1x512xf32>
    %cst_24 = arith.constant 0.000000e+00 : f32
    %50 = vector.broadcast %cst_24 : f32 to vector<1x512xf32>
    %51 = arith.subf %50, %47 : vector<1x512xf32>
    %52 = arith.select %49, %51, %47 : vector<1x512xi1>, vector<1x512xf32>
    %53 = arith.mulf %9, %9 : vector<1x512xf32>
    %54 = arith.mulf %10, %10 : vector<1x512xf32>
    %55 = arith.addf %53, %54 : vector<1x512xf32>
    %56 = math.sqrt %55 : vector<1x512xf32>
    %57 = arith.subf %6, %7 : vector<1x512xf32>
    %58 = arith.divf %57, %55 : vector<1x512xf32>
    %59 = arith.mulf %58, %9 : vector<1x512xf32>
    %60 = arith.mulf %58, %10 : vector<1x512xf32>
    %61 = tpu.concatenate %59, %60 in 0 : vector<1x512xf32>, vector<1x512xf32> -> vector<2x512xf32>
    %cst_25 = arith.constant 1.000000e+00 : f32
    %62 = vector.broadcast %cst_25 : f32 to vector<1x512xf32>
    %cst_26 = arith.constant 0.000000e+00 : f32
    %63 = vector.broadcast %cst_26 : f32 to vector<1x512xf32>
    %64 = tpu.concatenate %8, %52, %56, %59, %60, %62, %63, %63 in 0 : vector<1x512xf32>, vector<1x512xf32>, vector<1x512xf32>, vector<1x512xf32>, vector<1x512xf32>, vector<1x512xf32>, vector<1x512xf32>, vector<1x512xf32> -> vector<8x512xf32>
    %65 = arith.truncf %64 : vector<8x512xf32> to vector<8x512xbf16>
    %cst_27 = arith.constant dense<0.000000e+00> : vector<64x512xf32>
    %66 = tpu.matmul %1, %65, %cst_27 {dimension_numbers = #tpu.dot_dimension_numbers<[1], [0], [0], [1], [0, 0, 1, 1], [], []>} : vector<64x8xbf16>, vector<8x512xbf16>, vector<64x512xf32> -> vector<64x512xf32>
    %cst_28 = arith.constant 0.000000e+00 : f32
    %67 = vector.broadcast %cst_28 : f32 to vector<64x512xf32>
    %68 = arith.maximumf %66, %67 : vector<64x512xf32>
    %69 = vector.extract_strided_slice %2 {offsets = [0, 0, 0], sizes = [1, 64, 64], strides = [1, 1, 1]} : vector<3x64x64xbf16> to vector<1x64x64xbf16>
    %70 = vector.shape_cast %69 : vector<1x64x64xbf16> to vector<64x64xbf16>
    %71 = vector.extract_strided_slice %3 {offsets = [0, 0, 0], sizes = [1, 64, 1], strides = [1, 1, 1]} : vector<3x64x1xf32> to vector<1x64x1xf32>
    %72 = vector.shape_cast %71 : vector<1x64x1xf32> to vector<64x1xf32>
    %73 = arith.truncf %68 : vector<64x512xf32> to vector<64x512xbf16>
    %cst_29 = arith.constant dense<0.000000e+00> : vector<64x512xf32>
    %74 = tpu.matmul %70, %73, %cst_29 {dimension_numbers = #tpu.dot_dimension_numbers<[1], [0], [0], [1], [0, 0, 1, 1], [], []>} : vector<64x64xbf16>, vector<64x512xbf16>, vector<64x512xf32> -> vector<64x512xf32>
    %75 = vector.broadcast %72 : vector<64x1xf32> to vector<64x512xf32>
    %76 = arith.addf %74, %75 : vector<64x512xf32>
    %cst_30 = arith.constant 0.000000e+00 : f32
    %77 = vector.broadcast %cst_30 : f32 to vector<64x512xf32>
    %78 = arith.maximumf %76, %77 : vector<64x512xf32>
    %79 = vector.extract_strided_slice %2 {offsets = [1, 0, 0], sizes = [1, 64, 64], strides = [1, 1, 1]} : vector<3x64x64xbf16> to vector<1x64x64xbf16>
    %80 = vector.shape_cast %79 : vector<1x64x64xbf16> to vector<64x64xbf16>
    %81 = vector.extract_strided_slice %3 {offsets = [1, 0, 0], sizes = [1, 64, 1], strides = [1, 1, 1]} : vector<3x64x1xf32> to vector<1x64x1xf32>
    %82 = vector.shape_cast %81 : vector<1x64x1xf32> to vector<64x1xf32>
    %83 = arith.truncf %78 : vector<64x512xf32> to vector<64x512xbf16>
    %cst_31 = arith.constant dense<0.000000e+00> : vector<64x512xf32>
    %84 = tpu.matmul %80, %83, %cst_31 {dimension_numbers = #tpu.dot_dimension_numbers<[1], [0], [0], [1], [0, 0, 1, 1], [], []>} : vector<64x64xbf16>, vector<64x512xbf16>, vector<64x512xf32> -> vector<64x512xf32>
    %85 = vector.broadcast %82 : vector<64x1xf32> to vector<64x512xf32>
    %86 = arith.addf %84, %85 : vector<64x512xf32>
    %cst_32 = arith.constant 0.000000e+00 : f32
    %87 = vector.broadcast %cst_32 : f32 to vector<64x512xf32>
    %88 = arith.maximumf %86, %87 : vector<64x512xf32>
    %89 = vector.extract_strided_slice %2 {offsets = [2, 0, 0], sizes = [1, 64, 64], strides = [1, 1, 1]} : vector<3x64x64xbf16> to vector<1x64x64xbf16>
    %90 = vector.shape_cast %89 : vector<1x64x64xbf16> to vector<64x64xbf16>
    %91 = vector.extract_strided_slice %3 {offsets = [2, 0, 0], sizes = [1, 64, 1], strides = [1, 1, 1]} : vector<3x64x1xf32> to vector<1x64x1xf32>
    %92 = vector.shape_cast %91 : vector<1x64x1xf32> to vector<64x1xf32>
    %93 = arith.truncf %88 : vector<64x512xf32> to vector<64x512xbf16>
    %cst_33 = arith.constant dense<0.000000e+00> : vector<64x512xf32>
    %94 = tpu.matmul %90, %93, %cst_33 {dimension_numbers = #tpu.dot_dimension_numbers<[1], [0], [0], [1], [0, 0, 1, 1], [], []>} : vector<64x64xbf16>, vector<64x512xbf16>, vector<64x512xf32> -> vector<64x512xf32>
    %95 = vector.broadcast %92 : vector<64x1xf32> to vector<64x512xf32>
    %96 = arith.addf %94, %95 : vector<64x512xf32>
    %cst_34 = arith.constant 0.000000e+00 : f32
    %97 = vector.broadcast %cst_34 : f32 to vector<64x512xf32>
    %98 = arith.maximumf %96, %97 : vector<64x512xf32>
    %99 = arith.truncf %98 : vector<64x512xf32> to vector<64x512xbf16>
    %cst_35 = arith.constant dense<0.000000e+00> : vector<8x512xf32>
    %100 = tpu.matmul %4, %99, %cst_35 {dimension_numbers = #tpu.dot_dimension_numbers<[1], [0], [0], [1], [0, 0, 1, 1], [], []>} : vector<8x64xbf16>, vector<64x512xbf16>, vector<8x512xf32> -> vector<8x512xf32>
    %101 = vector.broadcast %5 : vector<8x1xf32> to vector<8x512xf32>
    %102 = arith.addf %100, %101 : vector<8x512xf32>
    %103 = vector.extract_strided_slice %102 {offsets = [0, 0], sizes = [2, 512], strides = [1, 1]} : vector<8x512xf32> to vector<2x512xf32>
    %104 = arith.mulf %103, %61 : vector<2x512xf32>
    %105 = vector.extract_strided_slice %102 {offsets = [2, 0], sizes = [6, 512], strides = [1, 1]} : vector<8x512xf32> to vector<6x512xf32>
    %106 = tpu.concatenate %104, %105 in 0 : vector<2x512xf32>, vector<6x512xf32> -> vector<8x512xf32>
    %c0_36 = arith.constant 0 : index
    %c0_37 = arith.constant 0 : index
    %107 = vector.load %arg7[%c0_36, %c0_37] : memref<8x512xf32, #tpu.memory_space<vmem>>, vector<8x512xf32>
    tpu.vector_store %arg7[%c0_36, %c0_37], %106 {strides = array<i32>} : memref<8x512xf32, #tpu.memory_space<vmem>>, vector<8x512xf32>,
    return
  }
  func.func @transform_0(%arg0: i32) -> (i32, i32) {
    %c0_i32 = arith.constant 0 : i32
    %c0_i32_0 = arith.constant 0 : i32
    return %c0_i32, %arg0 : i32, i32
  }
  func.func @transform_1(%arg0: i32) -> (i32, i32) {
    %c0_i32 = arith.constant 0 : i32
    %c0_i32_0 = arith.constant 0 : i32
    %c0_i32_1 = arith.constant 0 : i32
    return %c0_i32, %c0_i32_0 : i32, i32
  }
  func.func @transform_2(%arg0: i32) -> (i32, i32, i32) {
    %c0_i32 = arith.constant 0 : i32
    %c0_i32_0 = arith.constant 0 : i32
    %c0_i32_1 = arith.constant 0 : i32
    %c0_i32_2 = arith.constant 0 : i32
    return %c0_i32, %c0_i32_0, %c0_i32_1 : i32, i32, i32
  }
  func.func @transform_3(%arg0: i32) -> (i32, i32, i32) {
    %c0_i32 = arith.constant 0 : i32
    %c0_i32_0 = arith.constant 0 : i32
    %c0_i32_1 = arith.constant 0 : i32
    %c0_i32_2 = arith.constant 0 : i32
    return %c0_i32, %c0_i32_0, %c0_i32_1 : i32, i32, i32
  }
  func.func @transform_4(%arg0: i32) -> (i32, i32) {
    %c0_i32 = arith.constant 0 : i32
    %c0_i32_0 = arith.constant 0 : i32
    %c0_i32_1 = arith.constant 0 : i32
    return %c0_i32, %c0_i32_0 : i32, i32
  }
  func.func @transform_5(%arg0: i32) -> (i32, i32) {
    %c0_i32 = arith.constant 0 : i32
    %c0_i32_0 = arith.constant 0 : i32
    %c0_i32_1 = arith.constant 0 : i32
    return %c0_i32, %c0_i32_0 : i32, i32
  }
  func.func @transform_6(%arg0: i32) -> (i32, i32) {
    %c0_i32 = arith.constant 0 : i32
    %c0_i32_0 = arith.constant 0 : i32
    return %c0_i32, %arg0 : i32, i32
  }
}

</mosaic_0001>

<bundles_post_ra>
// kernel: tpu_custom_call.1
= control target key start
LH: loop header
LB: loop body
LE: loop exit
PB: predicated region body
PF: predicated region fallthrough
CT: control target
= control target key end

     0   :  { %11 = vsyncpa [#allocation3], 0  ;;  %s3112_s0 = inlined_call_operand.vmem [shape: f32[8,1024], index: 0, kind: input, shape index: {}]   ;;  %s3113_s1 = inlined_call_operand.vmem [shape: bf16[64,8], index: 1, kind: input, shape index: {}]   ;;  %s3114_s2 = inlined_call_operand.vmem [shape: bf16[3,64,64], index: 2, kind: input, shape index: {}]   ;;  %s3115_s3 = inlined_call_operand.vmem [shape: f32[3,64,1], index: 3, kind: input, shape index: {}]   ;;  %s3116_s4 = inlined_call_operand.vmem [shape: bf16[8,64], index: 4, kind: input, shape index: {}]   ;;  %s3117_s5 = inlined_call_operand.vmem [shape: f32[8,1], index: 5, kind: input, shape index: {}]   ;;  %s3118_s6 = inlined_call_operand.hbm [shape: f32[8,1024], index: 6, kind: output, shape index: {}]  }
   0x1   :  { %13 = vsyncpa [#allocation3 + $0x1], 0  ;;  %s2205_s21 = smov 0   ;;  %s2207_s22 = smov 0  }
   0x2   :  { %s2209_s23 = smov 0   ;;  %s2211_s24 = smov 0  }
   0x3 LB: > { %s2226_s25 = sadd.s32 4294967295, %s2167_s24   ;;  %s1869_s26 = sadd.s32 4294967294, %s2167_s24   ;;  %s2167_s24 = sphi %s2211_s24, %s3140_s24   ;;  %s2163_s23 = sphi %s2209_s23, %s3139_s23   ;;  %s2159_s22 = sphi %s2207_s22, %s3138_s22   ;;  %s2155_s21 = sphi %s2205_s21, %s3137_s21  }
   0x4   : > { %s2230_s27 = sadd.s32 1, %s2167_s24   ;;  %s157_s28 = sadd.s32 1, %s2163_s23 }
   0x5   : > { %s154_s29 = ssub.s32 %s2167_s24, %s2230_s27  ;;  %p167_p0 = scmp.ne.s32.totalorder %s2163_s23, %s2159_s22 }
   0x6   : > { %p155_p1 = scmp.eq.s32.totalorder %s154_s29, 0  ;;  %p168_p2 = scmp.eq.s32.totalorder %s2226_s25, 1 }
   0x7   : > { %p173_p3 = scmp.ne.s32.totalorder %s2159_s22, %s2155_s21  ;;  %p174_p4 = scmp.eq.s32.totalorder %s1869_s26, 1 }
   0x8   : > { %s2241_s30 = scalar_select %p155_p1, %s2163_s23, %s157_s28  }
   0x9   : > { %p2243_p5 = por %p168_p2, %p167_p0  ;;  %p2247_p6 = por %p174_p4, %p173_p3 }
   0xa   : > { %p1872_p7 = scmp.ge.s32.totalorder %s2167_s24, 1  ;;  %p216_p8 = scmp.lt.s32.totalorder %s2167_s24, 3 }
   0xc   : > { %p217_p9 = pnand %p1872_p7, %p216_p8 }
   0xd   : > { %s1874_s9 = sshll.u32 (!%p217_p9), %s2226_s25, 2  ;;  %s243_s29 = sand.u32 (!%p217_p9), 1, %s2159_s22  }
   0xe   : > { %220 = sbr.rel (%p217_p9) target bundleno = 1099 (0x44b), region = 44  ;;  %p247_p10 = scmp.lt.s32.totalorder (!%p217_p9), %s1874_s9, 7 }
   0xf   : > { %s2037_s11 = sshll.u32 (!%p217_p9), %s2226_s25, 5  ;;  %s1794_s25 = scalar_lea.sflag (!%p217_p9), [#allocation3], %s243_s29 }
  0x10   : > { %s1805_s14 = scalar_lea.hbm (!%p217_p9), %s3118_s6, %s2037_s11  ;;  %s2125_s26 = scalar_lea.hbm (!%p217_p9), %s3118_s6, 64 }
  0x11   : > { %s1809_s16 = sshll.u32 (!%p217_p9), %s1805_s14, 4  ;;  %s1810_s16 = int_to_ptr.hbm [resolvable:$true] %s1809_s16 }
  0x12   : > { %s2119_s17 = sshra.s32 (!%p217_p9), %s1810_s16, 4  ;;  %s2120_s17 = int_to_ptr.hbm [resolvable:$true] %s2119_s17 }
  0x13   : > { %s3142_s9 = smov (!%p247_p10, %s1874_s9), 7  ;;  %s2121_s18 = scalar_lea.hbm %s2120_s17, 32 }
  0x14   : > { %s1875_s10 = sshll.u32 %s3142_s9, 3  ;;  %s1873_s9 = sshll.u32 %s243_s29, 5 }
  0x15   : > { %s250_s13 = scalar_lea.vmem %s3112_s0, %s1875_s10  ;;  %s245_s10 = scalar_lea.vmem [#allocation2], %s1873_s9 }
  0x16   : > { %v2257_v0 = vld [vmem:[%s250_s13] sm:$0xff]  ;;  %v2259_v1 = vld [vmem:[%s250_s13 + $0x8] sm:$0xff]  ;;  %v2277_v12 = vld [vmem:[%s250_s13 + $0x10] sm:$0xff]  ;;  %s1807_s15 = sshll.u32 %s245_s10, 4  ;;  %p2122_p11 = scmp.ne.s32.totalorder %s2120_s17, %s2121_s18  ;;  %s1808_s15 = int_to_ptr.vmem [resolvable:$true] %s1807_s15 }
  0x17   : > { %v2262_v2 = vand.u32 2147483647, %v2257_v0  ;;  %v516_v3 = vmul.f32 %v2257_v0, %v2257_v0  ;;  %v2267_v4 = vand.u32 2147483647, %v2259_v1  ;;  %v517_v8 = vmul.f32 %v2259_v1, %v2259_v1  ;;  %v2279_v14 = vld [vmem:[%s250_s13 + $0x18] sm:$0xff]  ;;  %p2126_p0 = scmp.lt.s32.totalorder %s2120_s17, %s3118_s6  ;;  %p2127_p1 = scmp.lt.s32.totalorder %s2125_s26, %s2121_s18 }
  0x18   : > { %v2286_v18 = vand.u32 2147483647, %v2277_v12  ;;  %v2289_v19 = vand.u32 2147483647, %v2279_v14  ;;  %v588_v55 = vrot.slane %v2257_v0, 1  ;;  %p2123_p12 = pnand %p2122_p11, %p2243_p5 }
  0x19   : > { %v324_v5 = vrot.slane %v2262_v2, 1  ;;  %v524_v6 = vrot.slane %v516_v3, 1  ;;  %v325_v7 = vrot.slane %v2267_v4, 1  ;;  %v525_v13 = vrot.slane %v517_v8, 1  ;;  %p2128_p2 = por %p2127_p1, %p2126_p0 }
  0x1a   : > { %v326_v22 = vrot.slane %v2286_v18, 1  ;;  %v327_v24 = vrot.slane %v2289_v19, 1  ;;  %v404_v54 = vrot.slane %v2262_v2, 7  ;;  %p2124_p13 = pneg %p2123_p12 }
  0x1b   : > { %v332_v9 = vmax.f32 %v2262_v2, %v324_v5  ;;  %v2274_v10 = vadd.f32 %v524_v6, %v516_v3  ;;  %v333_v11 = vmax.f32 %v2267_v4, %v325_v7  ;;  %v2292_v20 = vadd.f32 %v525_v13, %v517_v8 }
  0x1c   : > { %v336_v21 = vmin.f32 %v2262_v2, %v324_v5  ;;  %v337_v26 = vmin.f32 %v2267_v4, %v325_v7  ;;  %v334_v31 = vmax.f32 %v2286_v18, %v326_v22  ;;  %v335_v34 = vmax.f32 %v2289_v19, %v327_v24  ;;  %p2129_p3 = pnand %p2128_p2, %p2124_p13 }
  0x1d   : > { %vm340_vm0 = vcmp.eq.f32.partialorder %v332_v9, 0.0  ;;  %2081 = vrsqrt.f32 %v2274_v10  ;;  %v2283_v15 = vrot.slane %v2274_v10, 3  ;;  %vm341_vm1 = vcmp.eq.f32.partialorder %v333_v11, 0.0 }
  0x1e   : > { %v344_v16 = vsel %vm340_vm0, 1.0, %v332_v9  ;;  %v345_v17 = vsel %vm341_vm1, 1.0, %v333_v11  ;;  %v2315_v39 = vrot.slane %v2292_v20, 3  ;;  %vm342_vm2 = vcmp.eq.f32.partialorder %v334_v31, 0.0 }
  0x1f   : > { %2083 = vrcp.f32 %v344_v16  ;;  %vm343_vm3 = vcmp.eq.f32.partialorder %v335_v34, 0.0  ;;  %v346_v46 = vsel %vm342_vm2, 1.0, %v334_v31  ;;  %v623_v48 = vand.u32 2147483648, %v2283_v15 }
  0x20   : > { %2085 = vrcp.f32 %v2283_v15  ;;  %v347_v50 = vsel %vm343_vm3, 1.0, %v335_v34  ;;  %vm617_vm4 = vweird.f32 %v2283_v15  ;;  %v338_v56 = vmin.f32 %v2286_v18, %v326_v22 }
  0x21   : > { %2087 = vrcp.f32 %v345_v17  ;;  %v621_v58 = vand.u32 2147483647, %v2283_v15  ;;  %v2341_v63 = vmin.f32 %v2289_v19, %v327_v24  ;;  %v624_v6 = vor.u32 1.1754944e-38, %v623_v48 }
  0x22   : > { %2089 = vrsqrt.f32 %v2292_v20  ;;  %v405_v8 = vrot.slane %v2267_v4, 7  ;;  %vm543_vm7 = vcmp.eq.f32.partialorder %v2274_v10, inf  ;;  %v596_v11 = vsub.f32 %v2257_v0, %v588_v55 }
  0x23   : > { %v2082_v23 = vpop.eup %2081  ;;  %2091 = vrcp.f32 %v2315_v39  ;;  %vm622_vm8 = vcmp.eq.f32.partialorder %v621_v58, 8.507059e+37  ;;  %vm545_vm9 = vcmp.eq.f32.partialorder %v2274_v10, 0.0  ;;  %v672_v22 = vrot.slane %v2257_v0, 3 }
  0x24   : > { %v537_v25 = vmul.f32 %v2082_v23, %v2274_v10  ;;  %2093 = vrcp.f32 %v346_v46  ;;  %vm2364_vm10 = vcmp.gt.f32.partialorder %v2262_v2, %v404_v54  ;;  %vm632_vm11 = vweird.f32 %v2315_v39 }
  0x25   : > { %v2084_v27 = vpop.eup %2083  ;;  %2095 = vrcp.f32 %v347_v50  ;;  %vm555_vm13 = vcmp.eq.f32.partialorder %v2292_v20, inf  ;;  %vm557_vm14 = vcmp.eq.f32.partialorder %v2292_v20, 0.0  ;;  %vm448_vm0 = vcmp.lt.f32.partialorder %v2257_v0, 0.0 }
  0x26   : > { %v2300_v28 = vpop.eup %2085  ;;  %v2302_v29 = vmul.f32 %v2084_v27, %v336_v21  ;;  %v538_v30 = vmul.f32 %v2082_v23, %v537_v25  ;;  %vm2393_vm1 = vcmp.gt.f32.partialorder %v2267_v4, %v405_v8  ;;  %v558_v55 = vand.u32 2147483648, %v2292_v20 }
  0x27   : > { %v2088_v32 = vpop.eup %2087  ;;  %v613_v33 = vmul.f32 %v2300_v28, %v2283_v15  ;;  %vm618_vm5 = vweird.f32 %v2300_v28  ;;  %v546_v15 = vand.u32 2147483648, %v2274_v10  ;;  %vm449_vm3 = vcmp.lt.f32.partialorder %v2259_v1, 0.0 }
  0x28   : > { %v2310_v35 = vmul.f32 %v2302_v29, %v2302_v29  ;;  %v539_v36 = vmul.f32 0.5, %v538_v30  ;;  %v2312_v37 = vmul.f32 %v2088_v32, %v337_v26  ;;  %v2090_v41 = vpop.eup %2089  ;;  %vm2336_vm6 = vmor %vm617_vm4, %vm618_vm5  ;;  %v684_v26 = vrot.slane %v2257_v0, 4 }
  0x29   : > { %v614_v38 = vsub.f32 1.0, %v613_v33  ;;  %v549_v49 = vmul.f32 %v2090_v41, %v2292_v20  ;;  %v2343_v3 = vpop.eup %2091  ;;  %v713_v33 = vrot.slane %v2257_v0, 2  ;;  %vm708_vm4 = vcmask 1040384  }
  0x2a   : > { %v360_v40 = vmul.f32 -0.0117212, %v2310_v35  ;;  %v540_v42 = vsub.f32 1.5, %v539_v36  ;;  %v2320_v43 = vmul.f32 %v2312_v37, %v2312_v37  ;;  %v2094_v24 = vpop.eup %2093  ;;  %v628_v30 = vmul.f32 %v2343_v3, %v2315_v39 }
  0x2b   : > { %v615_v45 = vmul.f32 %v2300_v28, %v614_v38  ;;  %v550_v62 = vmul.f32 %v2090_v41, %v549_v49  ;;  %vm633_vm12 = vweird.f32 %v2343_v3  ;;  %vm769_vm5 = vcmask 1041408  }
  0x2c   : > { %v364_v44 = vadd.f32 0.05265332, %v360_v40  ;;  %v541_v51 = vmul.f32 %v2082_v23, %v540_v42  ;;  %v361_v52 = vmul.f32 -0.0117212, %v2320_v43  ;;  %v629_v40 = vsub.f32 1.0, %v628_v30  ;;  %vm2383_vm15 = vmor %vm632_vm11, %vm633_vm12 }
  0x2d   : > { %v616_v57 = vadd.f32 %v2300_v28, %v615_v45  ;;  %v551_v13 = vmul.f32 0.5, %v550_v62  ;;  %v636_v45 = vand.u32 2147483647, %v2315_v39 }
  0x2e   : > { %v368_v47 = vmul.f32 %v364_v44, %v2310_v35  ;;  %v365_v59 = vadd.f32 0.05265332, %v361_v52  ;;  %v542_v5 = vmul.f32 %v541_v51, %v2274_v10  ;;  %v630_v48 = vmul.f32 %v2343_v3, %v629_v40 }
  0x2f   : > { %v620_v16 = vsel %vm2336_vm6, %v2300_v28, %v616_v57  ;;  %v552_v23 = vsub.f32 1.5, %v551_v13  ;;  %v2096_v28 = vpop.eup %2095  ;;  %v2388_v52 = vmul.f32 %v2094_v24, %v338_v56  ;;  %vm637_vm2 = vcmp.eq.f32.partialorder %v636_v45, 8.507059e+37 }
  0x30   : > { %v1876_v53 = vadd.f32 -0.11643287, %v368_v47  ;;  %v369_v7 = vmul.f32 %v365_v59, %v2320_v43  ;;  %v544_v25 = vsel %vm543_vm7, %v2274_v10, %v542_v5  ;;  %v625_v32 = vsel %vm622_vm8, %v624_v6, %v620_v16 }
  0x31   : > { %v553_v34 = vmul.f32 %v2090_v41, %v552_v23  ;;  %v2373_v44 = vsel %vm545_vm9, %v546_v15, %v544_v25  ;;  %v638_v41 = vand.u32 2147483648, %v2315_v39  ;;  %v626_v2 = vmul.f32 %v625_v32, %v596_v11 }
  0x32   : > { %v376_v60 = vmul.f32 %v1876_v53, %v2310_v35  ;;  %v1877_v17 = vadd.f32 -0.11643287, %v369_v7  ;;  %v589_v47 = vrot.slane %v2259_v1, 1  ;;  %v631_v39 = vadd.f32 %v2343_v3, %v630_v48 }
  0x33   : > { %v554_v50 = vmul.f32 %v553_v34, %v2292_v20  ;;  %v639_v51 = vor.u32 1.1754944e-38, %v638_v41  ;;  %v518_v57 = vmul.f32 %v2277_v12, %v2277_v12  ;;  %v2407_v4 = vmul.f32 %v2388_v52, %v2388_v52 }
  0x34   : > { %v380_v9 = vadd.f32 0.19354346, %v376_v60  ;;  %v377_v27 = vmul.f32 %v1877_v17, %v2320_v43  ;;  %v597_v56 = vsub.f32 %v2259_v1, %v589_v47  ;;  %v2413_v62 = vmul.f32 %v2096_v28, %v2341_v63 }
  0x35   : > { %v556_v61 = vsel %vm555_vm13, %v2292_v20, %v554_v50  ;;  %v362_v7 = vmul.f32 -0.0117212, %v2407_v4  ;;  %v2418_v8 = vmul.f32 %v684_v26, %v626_v2  ;;  %v526_v11 = vrot.slane %v518_v57, 1 }
  0x36   : > { %v384_v21 = vmul.f32 %v380_v9, %v2310_v35  ;;  %v381_v38 = vadd.f32 0.19354346, %v377_v27  ;;  %v673_v9 = vrot.slane %v2259_v1, 3  ;;  %v2425_v63 = vsel %vm557_vm14, %v558_v55, %v556_v61 }
  0x37   : > { %v685_v15 = vrot.slane %v2259_v1, 4  ;;  %v366_v16 = vadd.f32 0.05265332, %v362_v7  ;;  %v2434_v23 = vmul.f32 %v2413_v62, %v2413_v62  ;;  %v737_v20 = vrot.slane %v2373_v44, 1 }
  0x38   : > { %v1880_v31 = vadd.f32 -0.33262348, %v384_v21  ;;  %v385_v46 = vmul.f32 %v381_v38, %v2320_v43  ;;  %v714_v34 = vrot.slane %v2259_v1, 2  ;;  %vm774_vm6 = vcmask 1042432  }
  0x39   : > { %v370_v30 = vmul.f32 %v366_v16, %v2407_v4  ;;  %v738_v36 = vrot.slane %v2425_v63, 1  ;;  %vm779_vm7 = vcmask 1043456   ;;  %vm784_vm8 = vcmask 1044480  }
  0x3a   : > { %v392_v42 = vmul.f32 %v1880_v31, %v2310_v35  ;;  %v1881_v35 = vadd.f32 -0.33262348, %v385_v46  ;;  %v757_v31 = vrot.slane %v2418_v8, 4  ;;  %vm789_vm9 = vcmask 1045504  }
  0x3b   : > { %v1878_v38 = vadd.f32 -0.11643287, %v370_v30  ;;  %v406_v10 = vrot.slane %v2286_v18, 7 }
  0x3c   : > { %v396_v49 = vadd.f32 0.99997723, %v392_v42  ;;  %v393_v58 = vmul.f32 %v1881_v35, %v2320_v43  ;;  %v2415_v43 = vmul.f32 %v672_v22, %v626_v2  ;;  %v2430_v22 = vadd.f32 %v526_v11, %v518_v57 }
  0x3d   : > { %v363_v42 = vmul.f32 -0.0117212, %v2434_v23  ;;  %v378_v50 = vmul.f32 %v1878_v38, %v2407_v4  ;;  %v590_v35 = vrot.slane %v2277_v12, 1  ;;  %vm2482_vm13 = vcmp.gt.f32.partialorder %v2286_v18, %v406_v10 }
  0x3e   : > { %v400_v53 = vmul.f32 %v396_v49, %v2302_v29  ;;  %v635_v29 = vsel %vm2383_vm15, %v2343_v3, %v631_v39  ;;  %v397_v5 = vadd.f32 0.99997723, %v393_v58  ;;  %v749_v27 = vrot.slane %v2415_v43, 5 }
  0x3f   : > { %v640_v6 = vsel %vm637_vm2, %v639_v51, %v635_v29  ;;  %2097 = vrsqrt.f32 %v2430_v22  ;;  %v2444_v40 = vrot.slane %v2430_v22, 3  ;;  %v367_v55 = vadd.f32 0.05265332, %v363_v42 }
  0x40   : > { %v416_v59 = vsub.f32 1.5707964, %v400_v53  ;;  %v436_v60 = vrot.slane %v400_v53, 7  ;;  %v401_v13 = vmul.f32 %v397_v5, %v2312_v37  ;;  %v641_v21 = vmul.f32 %v640_v6, %v597_v56 }
  0x41   : > { %2099 = vrcp.f32 %v2444_v40  ;;  %v651_v54 = vand.u32 2147483647, %v2444_v40  ;;  %v382_v56 = vadd.f32 0.19354346, %v378_v50  ;;  %vm647_vm11 = vweird.f32 %v2444_v40 }
  0x42   : > { %v424_v3 = vrot.slane %v416_v59, 7  ;;  %v417_v25 = vsub.f32 1.5707964, %v401_v13  ;;  %v437_v26 = vrot.slane %v401_v13, 7  ;;  %v2451_v41 = vmul.f32 %v673_v9, %v641_v21 }
  0x43   : > { %v2453_v2 = vmul.f32 %v685_v15, %v641_v21  ;;  %v371_v61 = vmul.f32 %v367_v55, %v2434_v23  ;;  %vm2470_vm12 = vcmp.eq.f32.partialorder %v651_v54, 8.507059e+37  ;;  %v653_v13 = vand.u32 2147483648, %v2444_v40 }
  0x44   : > { %v444_v17 = vsel %vm2364_vm10, %v424_v3, %v436_v60  ;;  %v425_v32 = vrot.slane %v417_v25, 7  ;;  %vm794_vm10 = vcmask 1046528   ;;  %v750_v57 = vrot.slane %v2451_v41, 5 }
  0x45   : > { %v452_v37 = vsub.f32 3.1415927, %v444_v17  ;;  %v472_v24 = vrot.slane %v444_v17, 1  ;;  %v2098_v39 = vpop.eup %2097  ;;  %v758_v58 = vrot.slane %v2453_v2, 4  ;;  %v386_v3 = vmul.f32 %v382_v56, %v2407_v4 }
  0x46   : > { %v445_v45 = vsel %vm2393_vm1, %v425_v32, %v437_v26  ;;  %v561_v29 = vmul.f32 %v2098_v39, %v2430_v22  ;;  %v1879_v15 = vadd.f32 -0.11643287, %v371_v61  ;;  %v674_v11 = vrot.slane %v2277_v12, 3 }
  0x47   : > { %v460_v28 = vrot.slane %v452_v37, 1  ;;  %v453_v48 = vsub.f32 3.1415927, %v445_v45  ;;  %v473_v49 = vrot.slane %v445_v45, 1  ;;  %v2100_v16 = vpop.eup %2099  ;;  %v1882_v37 = vadd.f32 -0.33262348, %v386_v3 }
  0x48   : > { %v562_v9 = vmul.f32 %v2098_v39, %v561_v29  ;;  %vm648_vm14 = vweird.f32 %v2100_v16  ;;  %v379_v38 = vmul.f32 %v1879_v15, %v2434_v23  ;;  %vm450_vm1 = vcmp.lt.f32.partialorder %v2277_v12, 0.0 }
  0x49   : > { %v480_v44 = vsel %vm448_vm0, %v460_v28, %v472_v24  ;;  %v461_v53 = vrot.slane %v453_v48, 1  ;;  %v519_v24 = vmul.f32 %v2279_v14, %v2279_v14  ;;  %v643_v28 = vmul.f32 %v2100_v16, %v2444_v40  ;;  %vm2506_vm15 = vmor %vm647_vm11, %vm648_vm14 }
  0x4a   : > { %v484_v46 = vsub.f32 0.0, %v480_v44  ;;  %v504_v47 = vrot.slane %v480_v44, 7  ;;  %v563_v30 = vmul.f32 0.5, %v562_v9  ;;  %v394_v32 = vmul.f32 %v1882_v37, %v2407_v4 }
  0x4b   : > { %v481_v60 = vsel %vm449_vm3, %v461_v53, %v473_v49  ;;  %v644_v44 = vsub.f32 1.0, %v643_v28  ;;  %v383_v48 = vadd.f32 0.19354346, %v379_v38  ;;  %v527_v4 = vrot.slane %v519_v24, 1 }
  0x4c   : > { %v492_v51 = vrot.slane %v484_v46, 7  ;;  %v485_v6 = vsub.f32 0.0, %v481_v60  ;;  %v505_v7 = vrot.slane %v481_v60, 7  ;;  %v564_v18 = vsub.f32 1.5, %v563_v30 }
  0x4d   : > { %v398_v46 = vadd.f32 0.99997723, %v394_v32  ;;  %v645_v50 = vmul.f32 %v2100_v16, %v644_v44  ;;  %v387_v1 = vmul.f32 %v383_v48, %v2434_v23  ;;  %v598_v60 = vsub.f32 %v2277_v12, %v590_v35 }
  0x4e   : > { %v512_v59 = vsel %vm448_vm0, %v492_v51, %v504_v47  ;;  %v493_v21 = vrot.slane %v485_v6, 7  ;;  %v654_v47 = vor.u32 1.1754944e-38, %v653_v13  ;;  %v565_v55 = vmul.f32 %v2098_v39, %v564_v18 }
  0x4f   : > { %v725_v5 = vrot.slane %v512_v59, 3  ;;  %v402_v51 = vmul.f32 %v398_v46, %v2388_v52  ;;  %v646_v56 = vadd.f32 %v2100_v16, %v645_v50  ;;  %v1883_v59 = vadd.f32 -0.33262348, %v387_v1 }
  0x50   : > { %vm567_vm0 = vcmp.eq.f32.partialorder %v2430_v22, inf  ;;  %v566_v3 = vmul.f32 %v565_v55, %v2430_v22  ;;  %v2529_v9 = vadd.f32 %v527_v4, %v519_v24  ;;  %vm569_vm2 = vcmp.eq.f32.partialorder %v2430_v22, 0.0 }
  0x51   : > { %v765_v17 = vsel %vm708_vm4, %v713_v33, %v725_v5  ;;  %v513_v33 = vsel %vm449_vm3, %v493_v21, %v505_v7  ;;  %v418_v29 = vsub.f32 1.5707964, %v402_v51  ;;  %v650_v61 = vsel %vm2506_vm15, %v2100_v16, %v646_v56 }
  0x52   : > { %v770_v25 = vsel %vm769_vm5, %v765_v17, %v737_v20  ;;  %v726_v42 = vrot.slane %v513_v33, 3  ;;  %v395_v6 = vmul.f32 %v1883_v59, %v2434_v23  ;;  %2101 = vrsqrt.f32 %v2529_v9 }
  0x53   : > { %v775_v0 = vsel %vm774_vm6, %v770_v25, %v749_v27  ;;  %v570_v37 = vand.u32 2147483648, %v2430_v22  ;;  %v407_v24 = vrot.slane %v2289_v19, 7  ;;  %v568_v25 = vsel %vm567_vm0, %v2430_v22, %v566_v3  ;;  %v2553_v22 = vld [vmem:[%s3113_s1] sm:$0xff] }
  0x54   : > { %v780_v20 = vsel %vm779_vm7, %v775_v0, %v757_v31  ;;  %v766_v27 = vsel %vm708_vm4, %v714_v34, %v726_v42  ;;  %v399_v21 = vadd.f32 0.99997723, %v395_v6  ;;  %v686_v26 = vrot.slane %v2277_v12, 4 }
  0x55   : > { %v785_v45 = vsel %vm784_vm8, %v780_v20, 1.0  ;;  %v771_v31 = vsel %vm769_vm5, %v766_v27, %v738_v36  ;;  %v438_v36 = vrot.slane %v402_v51, 7  ;;  %v2544_v28 = vrot.slane %v2529_v9, 3 }
  0x56   : > { %v790_v49 = vsel %vm789_vm9, %v785_v45, 0.0  ;;  %v776_v54 = vsel %vm774_vm6, %v771_v31, %v750_v57  ;;  %v426_v57 = vrot.slane %v418_v29, 7  ;;  %v403_v30 = vmul.f32 %v399_v21, %v2413_v62 }
  0x57   : > { %v795_v10 = vsel %vm794_vm10, %v790_v49, 0.0  ;;  %v781_v63 = vsel %vm779_vm7, %v776_v54, %v758_v58  ;;  %v655_v58 = vsel %vm2470_vm12, %v654_v47, %v650_v61  ;;  %v571_v18 = vsel %vm569_vm2, %v570_v37, %v568_v25 }
  0x58   : > { %v799_v34 = vpack.c.bf16 %v795_v10, %v795_v10  ;;  %v786_v40 = vsel %vm784_vm8, %v781_v63, 1.0  ;;  %v446_v35 = vsel %vm2482_vm13, %v426_v57, %v438_v36  ;;  %v656_v16 = vmul.f32 %v655_v58, %v598_v60  ;;  %v2102_v62 = vpop.eup %2101 }
  0x59   : > { %v791_v39 = vsel %vm789_vm9, %v786_v40, 0.0  ;;  %v454_v13 = vsub.f32 3.1415927, %v446_v35  ;;  %v474_v15 = vrot.slane %v446_v35, 1  ;;  %v419_v20 = vsub.f32 1.5707964, %v403_v30 }
  0x5a   : > { %v837_v52 = vsel %vm779_vm7, %v799_v34, 0  ;;  %v796_v5 = vsel %vm794_vm10, %v791_v39, 0.0  ;;  %v2548_v33 = vmul.f32 %v674_v11, %v656_v16  ;;  %v439_v42 = vrot.slane %v403_v30, 7 }
  0x5b   : > { %855 = vmatpush.bf16.msra.mxu0 %v837_v52  ;;  %v800_v7 = vpack.c.bf16 %v796_v5, %v796_v5  ;;  %v462_v23 = vrot.slane %v454_v13, 1  ;;  %vm415_vm3 = vcmp.gt.f32.partialorder %v2289_v19, %v407_v24  ;;  %2103 = vrcp.f32 %v2544_v28 }
  0x5c   : > { %v2557_v45 = vmul.f32 %v686_v26, %v656_v16  ;;  %v427_v46 = vrot.slane %v419_v20, 7  ;;  %vm823_vm11 = vcmask 64512   ;;  %v715_v47 = vrot.slane %v2277_v12, 2 }
  0x5d   : > { %v840_v17 = vsel %vm779_vm7, %v800_v7, 0  ;;  %v482_v0 = vsel %vm450_vm1, %v462_v23, %v474_v15  ;;  %v573_v48 = vmul.f32 %v2102_v62, %v2529_v9  ;;  %v739_v49 = vrot.slane %v571_v18, 1 }
  0x5e   : > { %884 = vmatpush.bf16.msra.mxu1 %v840_v17  ;;  %v486_v32 = vsub.f32 0.0, %v482_v0  ;;  %v506_v38 = vrot.slane %v482_v0, 7  ;;  %1900 = vmatmul.msk.bf16.vlgmr.msra.gmra.mxu0 %vm823_vm11, %v2553_v22  ;;  %v751_v27 = vrot.slane %v2548_v33, 5  ;;  %v447_v50 = vsel %vm415_vm3, %v427_v46, %v439_v42 }
  0x5f   : > { %v455_v10 = vsub.f32 3.1415927, %v447_v50  ;;  %v475_v31 = vrot.slane %v447_v50, 1  ;;  %v574_v51 = vmul.f32 %v2102_v62, %v573_v48  ;;  %v759_v53 = vrot.slane %v2557_v45, 4 }
  0x60   : > { %v494_v44 = vrot.slane %v486_v32, 7  ;;  %vm451_vm12 = vcmp.lt.f32.partialorder %v2279_v14, 0.0  ;;  %vm579_vm13 = vcmp.eq.f32.partialorder %v2529_v9, inf  ;;  %v591_v1 = vrot.slane %v2279_v14, 1 }
  0x61   : > { %1904 = vmatmul.msk.bf16.vlgmr.msra.gmra.mxu1 %vm823_vm11, %v2553_v22  ;;  %v2104_v34 = vpop.eup %2103  ;;  %v463_v54 = vrot.slane %v455_v10, 1  ;;  %v575_v55 = vmul.f32 0.5, %v574_v51  ;;  %vm662_vm14 = vweird.f32 %v2544_v28  ;;  %v666_v29 = vand.u32 2147483647, %v2544_v28  ;;  %v2023_v51 = vld [vmem:[%s3113_s1 + $0x10] sm:$0xff] }
  0x62   : > { %v514_v19 = vsel %vm450_vm1, %v494_v44, %v506_v38  ;;  %v658_v63 = vmul.f32 %v2104_v34, %v2544_v28  ;;  %v668_v36 = vand.u32 2147483648, %v2544_v28  ;;  %vm663_vm15 = vweird.f32 %v2104_v34  ;;  %v2022_v28 = vld [vmem:[%s3113_s1 + $0x8] sm:$0xff] }
  0x63   : > { %v727_v4 = vrot.slane %v514_v19, 3  ;;  %v483_v52 = vsel %vm451_vm12, %v463_v54, %v475_v31  ;;  %v576_v40 = vsub.f32 1.5, %v575_v55  ;;  %vm581_vm0 = vcmp.eq.f32.partialorder %v2529_v9, 0.0  ;;  %vm2592_vm1 = vmor %vm662_vm14, %vm663_vm15 }
  0x64   : > { %v487_v61 = vsub.f32 0.0, %v483_v52  ;;  %v507_v39 = vrot.slane %v483_v52, 7  ;;  %v659_v57 = vsub.f32 1.0, %v658_v63  ;;  %v582_v6 = vand.u32 2147483648, %v2529_v9 }
  0x65   : > { %v767_v12 = vsel %vm708_vm4, %v715_v47, %v727_v4  ;;  %v577_v5 = vmul.f32 %v2102_v62, %v576_v40  ;;  %v599_v3 = vsub.f32 %v2279_v14, %v591_v1  ;;  %v669_v17 = vor.u32 1.1754944e-38, %v668_v36 }
  0x66   : > { %v772_v56 = vsel %vm769_vm5, %v767_v12, %v739_v49  ;;  %v495_v35 = vrot.slane %v487_v61, 7  ;;  %v660_v13 = vmul.f32 %v2104_v34, %v659_v57  ;;  %v716_v21 = vrot.slane %v2279_v14, 2 }
  0x67   : > { %v777_v59 = vsel %vm774_vm6, %v772_v56, %v751_v27  ;;  %v578_v16 = vmul.f32 %v577_v5, %v2529_v9  ;;  %vm667_vm2 = vcmp.eq.f32.partialorder %v666_v29, 8.507059e+37  ;;  %v675_v26 = vrot.slane %v2279_v14, 3 }
  0x68   : > { %v782_v60 = vsel %vm779_vm7, %v777_v59, %v759_v53  ;;  %v515_v37 = vsel %vm451_vm12, %v495_v35, %v507_v39  ;;  %v661_v24 = vadd.f32 %v2104_v34, %v660_v13  ;;  %v687_v20 = vrot.slane %v2279_v14, 4  ;;  %v2024_v53 = vld [vmem:[%s3113_s1 + $0x18] sm:$0xff] }
  0x69   : > { %v787_v58 = vsel %vm784_vm8, %v782_v60, 1.0  ;;  %v580_v25 = vsel %vm579_vm13, %v2529_v9, %v578_v16  ;;  %v728_v30 = vrot.slane %v515_v37, 3 }
  0x6a   : > { %v792_v7 = vsel %vm789_vm9, %v787_v58, 0.0  ;;  %v583_v32 = vsel %vm581_vm0, %v582_v6, %v580_v25  ;;  %v665_v38 = vsel %vm2592_vm1, %v2104_v34, %v661_v24 }
  0x6b   : > { %v797_v15 = vsel %vm794_vm10, %v792_v7, 0.0  ;;  %v670_v42 = vsel %vm667_vm2, %v669_v17, %v665_v38  ;;  %v740_v18 = vrot.slane %v583_v32, 1  ;;  %v768_v44 = vsel %vm708_vm4, %v716_v21, %v728_v30 }
  0x6c   : > { %v801_v23 = vpack.c.bf16 %v797_v15, %v797_v15  ;;  %v671_v62 = vmul.f32 %v670_v42, %v599_v3 }
  0x6d   : > { %v773_v9 = vsel %vm769_vm5, %v768_v44, %v740_v18 }
  0x6e   : > { %v843_v0 = vsel %vm779_vm7, %v801_v23, 0  ;;  %1901 = vmatmul.msk.bf16.gmra.mxu0 %vm823_vm11, %v2022_v28  ;;  %v2615_v46 = vmul.f32 %v675_v26, %v671_v62  ;;  %v2617_v47 = vmul.f32 %v687_v20, %v671_v62 }
  0x6f   : > { %913 = vmatpush.bf16.msra.mxu2 %v843_v0 }
  0x70   : > { %v752_v14 = vrot.slane %v2615_v46, 5  ;;  %v760_v48 = vrot.slane %v2617_v47, 4 }
  0x71   : > { %1905 = vmatmul.msk.bf16.gmra.mxu1 %vm823_vm11, %v2022_v28 }
  0x72   : > { %1908 = vmatmul.msk.bf16.vlgmr.msra.gmra.mxu2 %vm823_vm11, %v2553_v22  ;;  %v778_v19 = vsel %vm774_vm6, %v773_v9, %v752_v14  ;;  %vm1072_vm6 = vcmask 523264  }
  0x73   : > { %v783_v49 = vsel %vm779_vm7, %v778_v19, %v760_v48 }
  0x74   : > { %v788_v27 = vsel %vm784_vm8, %v783_v49, 1.0 }
  0x75   : > { %v793_v50 = vsel %vm789_vm9, %v788_v27, 0.0 }
  0x76   : > { %v798_v4 = vsel %vm794_vm10, %v793_v50, 0.0 }
  0x77   : > { %v802_v10 = vpack.c.bf16 %v798_v4, %v798_v4 }
  0x79   : > { %v846_v31 = vsel %vm779_vm7, %v802_v10, 0  ;;  %v2667_v10 = vld [vmem:[%s3114_s2] sm:$0xff] }
  0x7a   : > { %942 = vmatpush.bf16.msra.mxu3 %v846_v31 }
  0x7d   : > { %1912 = vmatmul.msk.bf16.vlgmr.msra.gmra.mxu3 %vm823_vm11, %v2553_v22 }
  0x7e   : > { %1902 = vmatmul.msk.bf16.gmra.mxu0 %vm823_vm11, %v2023_v51 }
  0x81   : > { %1906 = vmatmul.msk.bf16.gmra.mxu1 %vm823_vm11, %v2023_v51 }
  0x82   : > { %1909 = vmatmul.msk.bf16.gmra.mxu2 %vm823_vm11, %v2022_v28 }
  0x8d   : > { %1913 = vmatmul.msk.bf16.gmra.mxu3 %vm823_vm11, %v2022_v28 }
  0x8e   : > { %1903 = vmatmul.msk.bf16.gmra.mxu0 %vm823_vm11, %v2024_v53 }
  0x91   : > { %1907 = vmatmul.msk.bf16.gmra.mxu1 %vm823_vm11, %v2024_v53 }
  0x92   : > { %1910 = vmatmul.msk.bf16.gmra.mxu2 %vm823_vm11, %v2023_v51 }
  0x9d   : > { %1914 = vmatmul.msk.bf16.gmra.mxu3 %vm823_vm11, %v2023_v51 }
  0xa2   : > { %1911 = vmatmul.msk.bf16.gmra.mxu2 %vm823_vm11, %v2024_v53 }
  0xad   : > { %1915 = vmatmul.msk.bf16.gmra.mxu3 %vm823_vm11, %v2024_v53 }
  0xdb   : > { %v857_v22 = vpop.f32.mrf.mxu0 }
  0xdc   : > { %v964_v62 = vmax.f32 %v857_v22, 0.0 }
  0xde   : > { %v886_v1 = vpop.f32.mrf.mxu1 }
  0xdf   : > { %v965_v14 = vmax.f32 %v886_v1, 0.0  ;;  %v2169_v1 = vmov 0  }
  0xe0   : > { %2078 = vset.pattern.permute.xlu0 %v2169_v1  ;;  %2079 = vset.pattern.permute.xlu1 %v2169_v1 }
  0xe1   : > { %2080 = vset.pattern.permute.xlu2 %v2169_v1 }
  0xe3   : > { %v859_v34 = vpop.f32.mrf.mxu0 }
  0xe4   : > { %v968_v44 = vmax.f32 %v859_v34, 0.0 }
  0xe6   : > { %v888_v12 = vpop.f32.mrf.mxu1  ;;  %v996_v50 = vpack.c.bf16 %v968_v44, %v964_v62  ;;  %v310_v62 = vld [vmem:[%s3115_s3 + $0xa0] sm:$0xff]  ;;  %v312_v44 = vld [vmem:[%s3115_s3 + $0xb0] sm:$0xff] }
  0xe7   : > { %v969_v48 = vmax.f32 %v888_v12, 0.0 }
  0xe9   : > { %v997_v4 = vpack.c.bf16 %v969_v48, %v965_v14  ;;  %v309_v14 = vld [vmem:[%s3115_s3 + $0x98] sm:$0xff]  ;;  %v311_v48 = vld [vmem:[%s3115_s3 + $0xa8] sm:$0xff] }
  0xeb   : > { %v862_v54 = vpop.f32.mrf.mxu0 }
  0xec   : > { %v972_v28 = vmax.f32 %v862_v54, 0.0  ;;  %v296_v54 = vld [vmem:[%s3115_s3 + $0x30] sm:$0xff] }
  0xed   : > { %1044 = vperm.xlu0 %2078, %v296_v54  }
  0xee   : > { %v891_v55 = vpop.f32.mrf.mxu1 }
  0xef   : > { %v973_v42 = vmax.f32 %v891_v55, 0.0  ;;  %v294_v55 = vld [vmem:[%s3115_s3 + $0x20] sm:$0xff] }
  0xf0   : > { %1034 = vperm.xlu1 %2079, %v294_v55  }
  0xf3   : > { %v864_v63 = vpop.f32.mrf.mxu0 }
  0xf4   : > { %v976_v0 = vmax.f32 %v864_v63, 0.0 }
  0xf5   : > { %v2648_v56 = vpop.f32.mrf.mxu2 }
  0xf6   : > { %v893_v29 = vpop.f32.mrf.mxu1  ;;  %v1000_v9 = vpack.c.bf16 %v976_v0, %v972_v28  ;;  %v305_v28 = vld [vmem:[%s3115_s3 + $0x78] sm:$0xff]  ;;  %v2027_v0 = vld [vmem:[%s3114_s2 + $0x10] sm:$0xff] }
  0xf7   : > { %v977_v18 = vmax.f32 %v893_v29, 0.0 }
  0xf9   : > { %v1001_v19 = vpack.c.bf16 %v977_v18, %v973_v42  ;;  %v301_v42 = vld [vmem:[%s3115_s3 + $0x58] sm:$0xff] }
  0xfa   : > { %v293_v18 = vld [vmem:[%s3115_s3 + $0x18] sm:$0xff] }
  0xfb   : > { %v867_v59 = vpop.f32.mrf.mxu0 }
  0xfc   : > { %v980_v17 = vmax.f32 %v867_v59, 0.0 }
  0xfd   : > { %v2650_v36 = vpop.f32.mrf.mxu2 }
  0xfe   : > { %v896_v52 = vpop.f32.mrf.mxu1 }
  0xff   : > { %v981_v23 = vmax.f32 %v896_v52, 0.0 }
 0x100   : > { %v2652_v40 = vpop.f32.mrf.mxu3 }
 0x103   : > { %v869_v61 = vpop.f32.mrf.mxu0 }
 0x104   : > { %v984_v37 = vmax.f32 %v869_v61, 0.0 }
 0x105   : > { %v2654_v60 = vpop.f32.mrf.mxu2 }
 0x106   : > { %v898_v39 = vpop.f32.mrf.mxu1  ;;  %v1004_v38 = vpack.c.bf16 %v984_v37, %v980_v17  ;;  %v974_v61 = vmax.f32 %v2654_v60, 0.0 }
 0x107   : > { %v985_v24 = vmax.f32 %v898_v39, 0.0  ;;  %v297_v39 = vld [vmem:[%s3115_s3 + $0x38] sm:$0xff] }
 0x108   : > { %v2656_v57 = vpop.f32.mrf.mxu3  ;;  %1049 = vperm.xlu0 %2078, %v297_v39  }
 0x109   : > { %v1005_v20 = vpack.c.bf16 %v985_v24, %v981_v23  ;;  %v971_v24 = vmax.f32 %v2656_v57, 0.0  ;;  %v300_v57 = vld [vmem:[%s3115_s3 + $0x50] sm:$0xff] }
 0x10b   : > { %v872_v5 = vpop.f32.mrf.mxu0 }
 0x10c   : > { %v988_v3 = vmax.f32 %v872_v5, 0.0  ;;  %v2026_v5 = vld [vmem:[%s3114_s2 + $0x8] sm:$0xff] }
 0x10d   : > { %v2658_v58 = vpop.f32.mrf.mxu2 }
 0x10e   : > { %v901_v6 = vpop.f32.mrf.mxu1  ;;  %v978_v29 = vmax.f32 %v2658_v58, 0.0 }
 0x10f   : > { %v989_v13 = vmax.f32 %v901_v6, 0.0  ;;  %v970_v6 = vmax.f32 %v2650_v36, 0.0  ;;  %v295_v36 = vld [vmem:[%s3115_s3 + $0x28] sm:$0xff] }
 0x110   : > { %v2660_v7 = vpop.f32.mrf.mxu3  ;;  %1039 = vperm.xlu1 %2079, %v295_v36  }
 0x111   : > { %v975_v37 = vmax.f32 %v2660_v7, 0.0 }
 0x113   : > { %v874_v15 = vpop.f32.mrf.mxu0 }
 0x114   : > { %v992_v16 = vmax.f32 %v874_v15, 0.0 }
 0x115   : > { %v925_v35 = vpop.f32.mrf.mxu2 }
 0x116   : > { %v903_v11 = vpop.f32.mrf.mxu1  ;;  %v1008_v25 = vpack.c.bf16 %v992_v16, %v988_v3  ;;  %v982_v63 = vmax.f32 %v925_v35, 0.0  ;;  %v1002_v3 = vpack.c.bf16 %v978_v29, %v974_v61  ;;  %v966_v35 = vmax.f32 %v2648_v56, 0.0  ;;  %v290_v56 = vld [vmem:[%s3115_s3] sm:$0xff] }
 0x117   : > { %v993_v21 = vmax.f32 %v903_v11, 0.0  ;;  %1014 = vperm.xlu0 %2078, %v290_v56  }
 0x118   : > { %1089 = vmatpush.bf16.msrb.mxu0 %v1008_v25  ;;  %v2662_v30 = vpop.f32.mrf.mxu3  ;;  %v998_v58 = vpack.c.bf16 %v970_v6, %v966_v35 }
 0x119   : > { %v1009_v26 = vpack.c.bf16 %v993_v21, %v989_v13  ;;  %v979_v21 = vmax.f32 %v2662_v30, 0.0  ;;  %v967_v30 = vmax.f32 %v2652_v40, 0.0  ;;  %v302_v40 = vld [vmem:[%s3115_s3 + $0x60] sm:$0xff] }
 0x11b   : > { %1118 = vmatpush.bf16.msrb.mxu1 %v1009_v26  ;;  %v1003_v25 = vpack.c.bf16 %v979_v21, %v975_v37  ;;  %v291_v26 = vld [vmem:[%s3115_s3 + $0x8] sm:$0xff]  ;;  %v999_v7 = vpack.c.bf16 %v971_v24, %v967_v30 }
 0x11c   : > { %1090 = vmatpush.bf16.msrb.mxu0 %v1004_v38  ;;  %1019 = vperm.xlu1 %2079, %v291_v26   ;;  %v299_v38 = vld [vmem:[%s3115_s3 + $0x48] sm:$0xff] }
 0x11d   : > { %v927_v32 = vpop.f32.mrf.mxu2 }
 0x11e   : > { %v986_v34 = vmax.f32 %v927_v32, 0.0  ;;  %v292_v32 = vld [vmem:[%s3115_s3 + $0x10] sm:$0xff] }
 0x11f   : > { %1119 = vmatpush.bf16.msrb.mxu1 %v1005_v20  ;;  %1286 = vperm.xlu0 %2078, %v305_v28   ;;  %v2028_v20 = vld [vmem:[%s3114_s2 + $0x18] sm:$0xff] }
 0x120   : > { %1091 = vmatpush.bf16.msrb.mxu0 %v1000_v9  ;;  %v954_v49 = vpop.f32.mrf.mxu3  ;;  %v1006_v52 = vpack.c.bf16 %v986_v34, %v982_v63  ;;  %1024 = vperm.xlu2 %2080, %v292_v32   ;;  %v304_v9 = vld [vmem:[%s3115_s3 + $0x70] sm:$0xff] }
 0x121   : > { %v983_v17 = vmax.f32 %v954_v49, 0.0  ;;  %v315_v49 = vld [vmem:[%s3117_s5] sm:$0xff] }
 0x123   : > { %1120 = vmatpush.bf16.msrb.mxu1 %v1001_v19  ;;  %v303_v19 = vld [vmem:[%s3115_s3 + $0x68] sm:$0xff] }
 0x124   : > { %1092 = vmatpush.bf16.msrb.mxu0 %v996_v50  ;;  %1271 = vperm.xlu1 %2079, %v302_v40   ;;  %v298_v50 = vld [vmem:[%s3115_s3 + $0x40] sm:$0xff] }
 0x125   : > { %v930_v27 = vpop.f32.mrf.mxu2 }
 0x126   : > { %v990_v53 = vmax.f32 %v930_v27, 0.0  ;;  %v306_v27 = vld [vmem:[%s3115_s3 + $0x80] sm:$0xff] }
 0x127   : > { %1121 = vmatpush.bf16.msrb.mxu1 %v997_v4  ;;  %1932 = vmatmul.msk.bf16.vlgmr.msrb.gmra.mxu0 %vm1072_vm6, %v2667_v10  ;;  %v313_v4 = vld [vmem:[%s3115_s3 + $0xb8] sm:$0xff] }
 0x128   : > { %v956_v31 = vpop.f32.mrf.mxu3  ;;  %1261 = vperm.xlu0 %2078, %v300_v57   ;;  %1029 = vperm.xlu2 %2080, %v293_v18  }
 0x129   : > { %v987_v16 = vmax.f32 %v956_v31, 0.0  ;;  %v307_v31 = vld [vmem:[%s3115_s3 + $0x88] sm:$0xff] }
 0x12a   : > { %1936 = vmatmul.msk.bf16.vlgmr.msrb.gmra.mxu1 %vm1072_vm6, %v2667_v10 }
 0x12b   : > { %v1007_v23 = vpack.c.bf16 %v987_v16, %v983_v17 }
 0x12c   : > { %1266 = vperm.xlu1 %2079, %v301_v42  }
 0x12d   : > { %v932_v51 = vpop.f32.mrf.mxu2 }
 0x12e   : > { %v994_v22 = vmax.f32 %v932_v51, 0.0 }
 0x130   : > { %v1010_v12 = vpack.c.bf16 %v994_v22, %v990_v53  ;;  %v959_v59 = vpop.f32.mrf.mxu3  ;;  %1256 = vperm.xlu0 %2078, %v299_v38   ;;  %1281 = vperm.xlu2 %2080, %v304_v9  }
 0x131   : > { %v991_v13 = vmax.f32 %v959_v59, 0.0 }
 0x132   : > { %1147 = vmatpush.bf16.msrb.mxu2 %v1010_v12 }
 0x134   : > { %1517 = vperm.xlu1 %2079, %v312_v44  }
 0x136   : > { %1148 = vmatpush.bf16.msrb.mxu2 %v1006_v52 }
 0x137   : > { %1933 = vmatmul.msk.bf16.gmra.mxu0 %vm1072_vm6, %v2026_v5 }
 0x138   : > { %v961_v60 = vpop.f32.mrf.mxu3  ;;  %1507 = vperm.xlu0 %2078, %v310_v62   ;;  %1276 = vperm.xlu2 %2080, %v303_v19  }
 0x139   : > { %v995_v15 = vmax.f32 %v961_v60, 0.0 }
 0x13a   : > { %1149 = vmatpush.bf16.msrb.mxu2 %v1002_v3  ;;  %1937 = vmatmul.msk.bf16.gmra.mxu1 %vm1072_vm6, %v2026_v5 }
 0x13b   : > { %v1011_v11 = vpack.c.bf16 %v995_v15, %v991_v13 }
 0x13c   : > { %1512 = vperm.xlu1 %2079, %v311_v48  }
 0x13d   : > { %1176 = vmatpush.bf16.msrb.mxu3 %v1011_v11 }
 0x13e   : > { %1150 = vmatpush.bf16.msrb.mxu2 %v998_v58 }
 0x140   : > { %1502 = vperm.xlu0 %2078, %v309_v14   ;;  %1251 = vperm.xlu2 %2080, %v298_v50  }
 0x141   : > { %1940 = vmatmul.msk.bf16.vlgmr.msrb.gmra.mxu2 %vm1072_vm6, %v2667_v10  ;;  %1177 = vmatpush.bf16.msrb.mxu3 %v1007_v23 }
 0x144   : > { %1487 = vperm.xlu1 %2079, %v306_v27  }
 0x145   : > { %1178 = vmatpush.bf16.msrb.mxu3 %v1003_v25 }
 0x147   : > { %1934 = vmatmul.msk.bf16.gmra.mxu0 %vm1072_vm6, %v2027_v0 }
 0x148   : > { %1723 = vperm.xlu0 %2078, %v315_v49   ;;  %1522 = vperm.xlu2 %2080, %v313_v4  }
 0x149   : > { %1179 = vmatpush.bf16.msrb.mxu3 %v999_v7 }
 0x14a   : > { %1938 = vmatmul.msk.bf16.gmra.mxu1 %vm1072_vm6, %v2027_v0 }
 0x14c   : > { %1944 = vmatmul.msk.bf16.vlgmr.msrb.gmra.mxu3 %vm1072_vm6, %v2667_v10  ;;  %v308_v10 = vld [vmem:[%s3115_s3 + $0x90] sm:$0xff] }
 0x150   : > { %1497 = vperm.xlu2 %2080, %v308_v10  }
 0x151   : > { %1941 = vmatmul.msk.bf16.gmra.mxu2 %vm1072_vm6, %v2026_v5 }
 0x157   : > { %1935 = vmatmul.msk.bf16.gmra.mxu0 %vm1072_vm6, %v2028_v20 }
 0x158   : > { %1492 = vperm.xlu2 %2080, %v307_v31  }
 0x15a   : > { %1939 = vmatmul.msk.bf16.gmra.mxu1 %vm1072_vm6, %v2028_v20 }
 0x15c   : > { %1945 = vmatmul.msk.bf16.gmra.mxu3 %vm1072_vm6, %v2026_v5 }
 0x15f   : > { %v2785_v5 = vpop.permute.xlu0 %1044 }
 0x161   : > { %1942 = vmatmul.msk.bf16.gmra.mxu2 %vm1072_vm6, %v2027_v0 }
 0x162   : > { %v2789_v3 = vpop.permute.xlu1 %1034 }
 0x16c   : > { %1946 = vmatmul.msk.bf16.gmra.mxu3 %vm1072_vm6, %v2027_v0 }
 0x171   : > { %1943 = vmatmul.msk.bf16.gmra.mxu2 %vm1072_vm6, %v2028_v20 }
 0x17a   : > { %v2793_v13 = vpop.permute.xlu2 %1024  ;;  %v2801_v56 = vpop.permute.xlu0 %1049 }
 0x17c   : > { %1947 = vmatmul.msk.bf16.gmra.mxu3 %vm1072_vm6, %v2028_v20 }
 0x182   : > { %v2803_v17 = vpop.permute.xlu1 %1039  ;;  %v2811_v32 = vpop.permute.xlu2 %1029 }
 0x189   : > { %v2819_v10 = vpop.permute.xlu0 %1014 }
 0x1a4   : > { %v1094_v51 = vpop.f32.mrf.mxu0 }
 0x1a7   : > { %v1123_v53 = vpop.f32.mrf.mxu1 }
 0x1ac   : > { %v1096_v22 = vpop.f32.mrf.mxu0 }
 0x1af   : > { %v1125_v1 = vpop.f32.mrf.mxu1 }
 0x1b4   : > { %v1099_v34 = vpop.f32.mrf.mxu0 }
 0x1b5   : > { %v1100_v44 = vadd.f32 %v1099_v34, %v2793_v13 }
 0x1b7   : > { %v1128_v12 = vpop.f32.mrf.mxu1  ;;  %v1209_v31 = vmax.f32 %v1100_v44, 0.0  ;;  %v2030_v44 = vld [vmem:[%s3114_s2 + $0x28] sm:$0xff] }
 0x1b8   : > { %v1129_v9 = vadd.f32 %v1128_v12, %v2793_v13  ;;  %v1095_v12 = vadd.f32 %v1094_v51, %v2819_v10 }
 0x1bc   : > { %v1101_v54 = vpop.f32.mrf.mxu0 }
 0x1bd   : > { %v1102_v14 = vadd.f32 %v1101_v54, %v2811_v32  ;;  %v1124_v54 = vadd.f32 %v1123_v53, %v2819_v10  ;;  %v2830_v53 = vld [vmem:[%s3114_s2 + $0x20] sm:$0xff] }
 0x1bf   : > { %v1130_v55 = vpop.f32.mrf.mxu1  ;;  %v1213_v34 = vmax.f32 %v1102_v14, 0.0 }
 0x1c0   : > { %v1131_v48 = vadd.f32 %v1130_v55, %v2811_v32 }
 0x1c4   : > { %v2781_v63 = vpop.f32.mrf.mxu2  ;;  %v1104_v29 = vpop.f32.mrf.mxu0 }
 0x1c5   : > { %v1105_v21 = vadd.f32 %v1104_v29, %v2789_v3  ;;  %v1210_v29 = vmax.f32 %v1129_v9, 0.0 }
 0x1c7   : > { %v1133_v59 = vpop.f32.mrf.mxu1  ;;  %v1217_v57 = vmax.f32 %v1105_v21, 0.0  ;;  %v1201_v21 = vmax.f32 %v1095_v12, 0.0 }
 0x1c8   : > { %v1134_v23 = vadd.f32 %v1133_v59, %v2789_v3  ;;  %v2821_v59 = vpop.permute.xlu1 %1019 }
 0x1c9   : > { %v1097_v55 = vadd.f32 %v1096_v22, %v2821_v59 }
 0x1ca   : > { %v1218_v40 = vmax.f32 %v1134_v23, 0.0 }
 0x1cb   : > { %v1205_v23 = vmax.f32 %v1097_v55, 0.0 }
 0x1cc   : > { %v2783_v52 = vpop.f32.mrf.mxu2  ;;  %v1106_v61 = vpop.f32.mrf.mxu0 }
 0x1cd   : > { %v1107_v37 = vadd.f32 %v1106_v61, %v2803_v17  ;;  %v1214_v61 = vmax.f32 %v1131_v48, 0.0 }
 0x1cf   : > { %v1135_v39 = vpop.f32.mrf.mxu1  ;;  %v2787_v6 = vpop.f32.mrf.mxu3  ;;  %v1221_v20 = vmax.f32 %v1107_v37, 0.0  ;;  %v1202_v37 = vmax.f32 %v1124_v54, 0.0 }
 0x1d0   : > { %v1136_v24 = vadd.f32 %v1135_v39, %v2803_v17  ;;  %v1126_v39 = vadd.f32 %v1125_v1, %v2821_v59 }
 0x1d1   : > { %v1241_v50 = vpack.c.bf16 %v1221_v20, %v1217_v57 }
 0x1d2   : > { %v1222_v42 = vmax.f32 %v1136_v24, 0.0  ;;  %v1206_v24 = vmax.f32 %v1126_v39, 0.0 }
 0x1d4   : > { %v2791_v35 = vpop.f32.mrf.mxu2  ;;  %v1109_v60 = vpop.f32.mrf.mxu0  ;;  %v1242_v4 = vpack.c.bf16 %v1222_v42, %v1218_v40  ;;  %v1234_v51 = vpack.c.bf16 %v1206_v24, %v1202_v37 }
 0x1d5   : > { %v1110_v11 = vadd.f32 %v1109_v60, %v2785_v5  ;;  %v1158_v9 = vadd.f32 %v2791_v35, %v2793_v13 }
 0x1d7   : > { %v1138_v58 = vpop.f32.mrf.mxu1  ;;  %v2795_v15 = vpop.f32.mrf.mxu3  ;;  %v1225_v28 = vmax.f32 %v1110_v11, 0.0  ;;  %v1238_v11 = vpack.c.bf16 %v1214_v61, %v1210_v29 }
 0x1d8   : > { %v1139_v36 = vadd.f32 %v1138_v58, %v2785_v5  ;;  %v1237_v58 = vpack.c.bf16 %v1213_v34, %v1209_v31 }
 0x1da   : > { %v1226_v0 = vmax.f32 %v1139_v36, 0.0 }
 0x1dc   : > { %v2797_v16 = vpop.f32.mrf.mxu2  ;;  %v1111_v25 = vpop.f32.mrf.mxu0 }
 0x1dd   : > { %v1112_v30 = vadd.f32 %v1111_v25, %v2801_v56  ;;  %v1233_v25 = vpack.c.bf16 %v1205_v23, %v1201_v21  ;;  %v1160_v42 = vadd.f32 %v2797_v16, %v2811_v32  ;;  %v1153_v16 = vadd.f32 %v2781_v63, %v2819_v10 }
 0x1df   : > { %v1140_v26 = vpop.f32.mrf.mxu1  ;;  %v2813_v38 = vpop.f32.mrf.mxu3  ;;  %v1229_v18 = vmax.f32 %v1112_v30, 0.0  ;;  %v1203_v29 = vmax.f32 %v1153_v16, 0.0 }
 0x1e0   : > { %v1141_v7 = vadd.f32 %v1140_v26, %v2801_v56 }
 0x1e1   : > { %v1245_v49 = vpack.c.bf16 %v1229_v18, %v1225_v28 }
 0x1e2   : > { %v1230_v62 = vmax.f32 %v1141_v7, 0.0 }
 0x1e3   : > { %1325 = vmatpush.bf16.msra.mxu0 %v1245_v49  ;;  %v1215_v49 = vmax.f32 %v1160_v42, 0.0 }
 0x1e4   : > { %v1162_v19 = vpop.f32.mrf.mxu2  ;;  %v1246_v27 = vpack.c.bf16 %v1230_v62, %v1226_v0 }
 0x1e5   : > { %v1163_v57 = vadd.f32 %v1162_v19, %v2789_v3  ;;  %v1155_v19 = vadd.f32 %v2783_v52, %v2821_v59 }
 0x1e6   : > { %1354 = vmatpush.bf16.msra.mxu1 %v1246_v27 }
 0x1e7   : > { %v1188_v60 = vpop.f32.mrf.mxu3  ;;  %1326 = vmatpush.bf16.msra.mxu0 %v1241_v50  ;;  %v1219_v14 = vmax.f32 %v1163_v57, 0.0  ;;  %v1211_v50 = vmax.f32 %v1158_v9, 0.0  ;;  %v2890_v57 = vpop.permute.xlu0 %1286 }
 0x1e8   : > { %v1189_v63 = vadd.f32 %v1188_v60, %v2811_v32  ;;  %v1182_v32 = vadd.f32 %v2787_v6, %v2819_v10  ;;  %v2032_v6 = vld [vmem:[%s3114_s2 + $0x38] sm:$0xff] }
 0x1e9   : > { %v1239_v31 = vpack.c.bf16 %v1215_v49, %v1211_v50 }
 0x1ea   : > { %1355 = vmatpush.bf16.msra.mxu1 %v1242_v4  ;;  %v1207_v4 = vmax.f32 %v1155_v19, 0.0  ;;  %v1204_v23 = vmax.f32 %v1182_v32, 0.0 }
 0x1eb   : > { %1327 = vmatpush.bf16.msra.mxu0 %v1237_v58 }
 0x1ec   : > { %v1164_v36 = vpop.f32.mrf.mxu2  ;;  %v1235_v12 = vpack.c.bf16 %v1207_v4, %v1203_v29 }
 0x1ed   : > { %v1165_v30 = vadd.f32 %v1164_v36, %v2803_v17 }
 0x1ee   : > { %1356 = vmatpush.bf16.msra.mxu1 %v1238_v11 }
 0x1ef   : > { %v1191_v22 = vpop.f32.mrf.mxu3  ;;  %1328 = vmatpush.bf16.msra.mxu0 %v1233_v25  ;;  %v1223_v18 = vmax.f32 %v1165_v30, 0.0  ;;  %v2900_v9 = vpop.permute.xlu0 %1261 }
 0x1f0   : > { %v1192_v54 = vadd.f32 %v1191_v22, %v2789_v3  ;;  %v1184_v3 = vadd.f32 %v2795_v15, %v2821_v59 }
 0x1f1   : > { %v1243_v27 = vpack.c.bf16 %v1223_v18, %v1219_v14 }
 0x1f2   : > { %1357 = vmatpush.bf16.msra.mxu1 %v1234_v51  ;;  %1964 = vmatmul.msk.bf16.vlgmr.msra.gmra.mxu0 %vm1072_vm6, %v2830_v53  ;;  %v1220_v36 = vmax.f32 %v1192_v54, 0.0 }
 0x1f4   : > { %v1167_v1 = vpop.f32.mrf.mxu2 }
 0x1f5   : > { %1968 = vmatmul.msk.bf16.vlgmr.msra.gmra.mxu1 %vm1072_vm6, %v2830_v53  ;;  %v1168_v28 = vadd.f32 %v1167_v1, %v2785_v5 }
 0x1f7   : > { %v1193_v26 = vpop.f32.mrf.mxu3  ;;  %v1227_v40 = vmax.f32 %v1168_v28, 0.0 }
 0x1f8   : > { %v1194_v52 = vadd.f32 %v1193_v26, %v2803_v17  ;;  %v1216_v17 = vmax.f32 %v1189_v63, 0.0 }
 0x1fa   : > { %v1224_v58 = vmax.f32 %v1194_v52, 0.0 }
 0x1fc   : > { %v1169_v0 = vpop.f32.mrf.mxu2  ;;  %v1244_v21 = vpack.c.bf16 %v1224_v58, %v1220_v36 }
 0x1fd   : > { %v1170_v7 = vadd.f32 %v1169_v0, %v2801_v56 }
 0x1ff   : > { %v1231_v20 = vmax.f32 %v1170_v7, 0.0  ;;  %v1196_v48 = vpop.f32.mrf.mxu3 }
 0x200   : > { %v1197_v35 = vadd.f32 %v1196_v48, %v2785_v5  ;;  %v1187_v5 = vadd.f32 %v2813_v38, %v2793_v13  ;;  %v1208_v13 = vmax.f32 %v1184_v3, 0.0 }
 0x201   : > { %v1247_v62 = vpack.c.bf16 %v1231_v20, %v1227_v40  ;;  %v2892_v40 = vpop.permute.xlu2 %1281 }
 0x202   : > { %1965 = vmatmul.msk.bf16.gmra.mxu0 %vm1072_vm6, %v2030_v44  ;;  %v1228_v55 = vmax.f32 %v1197_v35, 0.0  ;;  %v1212_v60 = vmax.f32 %v1187_v5, 0.0  ;;  %v1236_v37 = vpack.c.bf16 %v1208_v13, %v1204_v23 }
 0x203   : > { %1383 = vmatpush.bf16.msra.mxu2 %v1247_v62  ;;  %v2896_v62 = vpop.permute.xlu1 %1271 }
 0x204   : > { %v1240_v38 = vpack.c.bf16 %v1216_v17, %v1212_v60 }
 0x205   : > { %1969 = vmatmul.msk.bf16.gmra.mxu1 %vm1072_vm6, %v2030_v44 }
 0x207   : > { %1384 = vmatpush.bf16.msra.mxu2 %v1243_v27  ;;  %v1198_v34 = vpop.f32.mrf.mxu3 }
 0x208   : > { %v1199_v61 = vadd.f32 %v1198_v34, %v2801_v56  ;;  %v2031_v56 = vld [vmem:[%s3114_s2 + $0x30] sm:$0xff] }
 0x209   : > { %v2903_v48 = vpop.permute.xlu2 %1276 }
 0x20a   : > { %v1232_v39 = vmax.f32 %v1199_v61, 0.0 }
 0x20b   : > { %1385 = vmatpush.bf16.msra.mxu2 %v1239_v31 }
 0x20c   : > { %v1248_v11 = vpack.c.bf16 %v1232_v39, %v1228_v55 }
 0x20e   : > { %1412 = vmatpush.bf16.msra.mxu3 %v1248_v11 }
 0x20f   : > { %1386 = vmatpush.bf16.msra.mxu2 %v1235_v12  ;;  %v2915_v12 = vpop.permute.xlu1 %1266 }
 0x212   : > { %1972 = vmatmul.msk.bf16.vlgmr.msra.gmra.mxu2 %vm1072_vm6, %v2830_v53  ;;  %1413 = vmatpush.bf16.msra.mxu3 %v1244_v21  ;;  %v2921_v21 = vpop.permute.xlu0 %1256 }
 0x213   : > { %1966 = vmatmul.msk.bf16.gmra.mxu0 %vm1072_vm6, %v2031_v56 }
 0x215   : > { %1970 = vmatmul.msk.bf16.gmra.mxu1 %vm1072_vm6, %v2031_v56 }
 0x216   : > { %1414 = vmatpush.bf16.msra.mxu3 %v1240_v38 }
 0x21a   : > { %1415 = vmatpush.bf16.msra.mxu3 %v1236_v37 }
 0x21d   : > { %1976 = vmatmul.msk.bf16.vlgmr.msra.gmra.mxu3 %vm1072_vm6, %v2830_v53 }
 0x222   : > { %1973 = vmatmul.msk.bf16.gmra.mxu2 %vm1072_vm6, %v2030_v44 }
 0x223   : > { %1967 = vmatmul.msk.bf16.gmra.mxu0 %vm1072_vm6, %v2032_v6 }
 0x225   : > { %1971 = vmatmul.msk.bf16.gmra.mxu1 %vm1072_vm6, %v2032_v6 }
 0x22d   : > { %1977 = vmatmul.msk.bf16.gmra.mxu3 %vm1072_vm6, %v2030_v44 }
 0x232   : > { %1974 = vmatmul.msk.bf16.gmra.mxu2 %vm1072_vm6, %v2031_v56 }
 0x23d   : > { %1978 = vmatmul.msk.bf16.gmra.mxu3 %vm1072_vm6, %v2031_v56 }
 0x242   : > { %1975 = vmatmul.msk.bf16.gmra.mxu2 %vm1072_vm6, %v2032_v6 }
 0x24d   : > { %1979 = vmatmul.msk.bf16.gmra.mxu3 %vm1072_vm6, %v2032_v6  ;;  %v2927_v6 = vpop.permute.xlu2 %1251 }
 0x26f   : > { %v1330_v15 = vpop.f32.mrf.mxu0 }
 0x272   : > { %v2884_v10 = vpop.f32.mrf.mxu1 }
 0x277   : > { %v1332_v59 = vpop.f32.mrf.mxu0 }
 0x278   : > { %v1333_v13 = vadd.f32 %v1332_v59, %v2921_v21 }
 0x27a   : > { %v1361_v24 = vpop.f32.mrf.mxu1  ;;  %v1441_v59 = vmax.f32 %v1333_v13, 0.0 }
 0x27f   : > { %v1335_v25 = vpop.f32.mrf.mxu0 }
 0x280   : > { %v1336_v3 = vadd.f32 %v1335_v25, %v2900_v9 }
 0x282   : > { %v1364_v51 = vpop.f32.mrf.mxu1 }
 0x283   : > { %v1365_v32 = vadd.f32 %v1364_v51, %v2900_v9  ;;  %v1360_v51 = vadd.f32 %v2884_v10, %v2927_v6 }
 0x287   : > { %v1337_v53 = vpop.f32.mrf.mxu0 }
 0x288   : > { %v1338_v63 = vadd.f32 %v1337_v53, %v2915_v12  ;;  %v1362_v53 = vadd.f32 %v1361_v24, %v2921_v21 }
 0x28a   : > { %v1366_v22 = vpop.f32.mrf.mxu1  ;;  %v1449_v38 = vmax.f32 %v1338_v63, 0.0 }
 0x28b   : > { %v1367_v5 = vadd.f32 %v1366_v22, %v2915_v12 }
 0x28d   : > { %v1450_v22 = vmax.f32 %v1367_v5, 0.0 }
 0x290   : > { %v1340_v1 = vpop.f32.mrf.mxu0 }
 0x291   : > { %v1341_v34 = vadd.f32 %v1340_v1, %v2896_v62 }
 0x292   : > { %v1369_v26 = vpop.f32.mrf.mxu1 }
 0x293   : > { %v1370_v54 = vadd.f32 %v1369_v26, %v2896_v62  ;;  %v1453_v17 = vmax.f32 %v1341_v34, 0.0  ;;  %v1331_v26 = vadd.f32 %v1330_v15, %v2927_v6  ;;  %v2936_v15 = vld [vmem:[%s3114_s2 + $0x40] sm:$0xff] }
 0x295   : > { %v2886_v28 = vpop.f32.mrf.mxu2  ;;  %v1454_v60 = vmax.f32 %v1370_v54, 0.0 }
 0x298   : > { %v1342_v0 = vpop.f32.mrf.mxu0 }
 0x299   : > { %v1343_v16 = vadd.f32 %v1342_v0, %v2903_v48  ;;  %v1445_v0 = vmax.f32 %v1336_v3, 0.0 }
 0x29a   : > { %v1371_v30 = vpop.f32.mrf.mxu1 }
 0x29b   : > { %v1372_v31 = vadd.f32 %v1371_v30, %v2903_v48  ;;  %v1457_v58 = vmax.f32 %v1343_v16, 0.0  ;;  %v1446_v30 = vmax.f32 %v1365_v32, 0.0 }
 0x29d   : > { %v2888_v7 = vpop.f32.mrf.mxu2  ;;  %v1458_v36 = vmax.f32 %v1372_v31, 0.0  ;;  %v1477_v37 = vpack.c.bf16 %v1457_v58, %v1453_v17 }
 0x29e   : > { %v1391_v32 = vadd.f32 %v2888_v7, %v2921_v21  ;;  %v2035_v7 = vld [vmem:[%s3114_s2 + $0x50] sm:$0xff] }
 0x29f   : > { %v1478_v25 = vpack.c.bf16 %v1458_v36, %v1454_v60 }
 0x2a0   : > { %v1345_v20 = vpop.f32.mrf.mxu0  ;;  %v2894_v42 = vpop.f32.mrf.mxu3 }
 0x2a1   : > { %v1346_v14 = vadd.f32 %v1345_v20, %v2892_v40  ;;  %v1473_v20 = vpack.c.bf16 %v1449_v38, %v1445_v0  ;;  %v1389_v38 = vadd.f32 %v2886_v28, %v2927_v6 }
 0x2a2   : > { %v1374_v18 = vpop.f32.mrf.mxu1 }
 0x2a3   : > { %v1375_v19 = vadd.f32 %v1374_v18, %v2892_v40  ;;  %v1461_v52 = vmax.f32 %v1346_v14, 0.0  ;;  %v1442_v18 = vmax.f32 %v1362_v53, 0.0  ;;  %v1474_v14 = vpack.c.bf16 %v1450_v22, %v1446_v30 }
 0x2a5   : > { %v2898_v44 = vpop.f32.mrf.mxu2  ;;  %v1462_v55 = vmax.f32 %v1375_v19, 0.0  ;;  %v1437_v19 = vmax.f32 %v1331_v26, 0.0 }
 0x2a7   : > { %v1469_v24 = vpack.c.bf16 %v1441_v59, %v1437_v19 }
 0x2a8   : > { %v1347_v49 = vpop.f32.mrf.mxu0  ;;  %v2906_v27 = vpop.f32.mrf.mxu3 }
 0x2a9   : > { %v1348_v50 = vadd.f32 %v1347_v49, %v2890_v57  ;;  %v1438_v49 = vmax.f32 %v1360_v51, 0.0 }
 0x2aa   : > { %v1376_v4 = vpop.f32.mrf.mxu1 }
 0x2ab   : > { %v1377_v29 = vadd.f32 %v1376_v4, %v2890_v57  ;;  %v1465_v61 = vmax.f32 %v1348_v50, 0.0  ;;  %v1470_v50 = vpack.c.bf16 %v1442_v18, %v1438_v49 }
 0x2ad   : > { %v2911_v35 = vpop.f32.mrf.mxu2  ;;  %v1466_v39 = vmax.f32 %v1377_v29, 0.0  ;;  %v1481_v11 = vpack.c.bf16 %v1465_v61, %v1461_v52 }
 0x2af   : > { %v1482_v56 = vpack.c.bf16 %v1466_v39, %v1462_v55  ;;  %1561 = vmatpush.bf16.msrb.mxu0 %v1481_v11  ;;  %v2034_v55 = vld [vmem:[%s3114_s2 + $0x48] sm:$0xff]  ;;  %v1396_v11 = vadd.f32 %v2911_v35, %v2915_v12  ;;  %v1443_v35 = vmax.f32 %v1391_v32, 0.0 }
 0x2b0   : > { %v2925_v23 = vpop.f32.mrf.mxu3 }
 0x2b1   : > { %1590 = vmatpush.bf16.msrb.mxu1 %v1482_v56  ;;  %v1394_v56 = vadd.f32 %v2898_v44, %v2900_v9  ;;  %v1451_v60 = vmax.f32 %v1396_v11, 0.0  ;;  %v2998_v11 = vpop.permute.xlu0 %1507 }
 0x2b3   : > { %1562 = vmatpush.bf16.msrb.mxu0 %v1477_v37  ;;  %v1447_v37 = vmax.f32 %v1394_v56, 0.0 }
 0x2b5   : > { %v1398_v1 = vpop.f32.mrf.mxu2  ;;  %1591 = vmatpush.bf16.msrb.mxu1 %v1478_v25  ;;  %v1475_v53 = vpack.c.bf16 %v1451_v60, %v1447_v37  ;;  %v1439_v25 = vmax.f32 %v1389_v38, 0.0 }
 0x2b6   : > { %v1399_v39 = vadd.f32 %v1398_v1, %v2896_v62 }
 0x2b7   : > { %1563 = vmatpush.bf16.msrb.mxu0 %v1473_v20  ;;  %v1471_v0 = vpack.c.bf16 %v1443_v35, %v1439_v25 }
 0x2b8   : > { %v1424_v16 = vpop.f32.mrf.mxu3  ;;  %v1455_v3 = vmax.f32 %v1399_v39, 0.0 }
 0x2b9   : > { %1592 = vmatpush.bf16.msrb.mxu1 %v1474_v14  ;;  %v1425_v59 = vadd.f32 %v1424_v16, %v2915_v12  ;;  %v1418_v12 = vadd.f32 %v2894_v42, %v2927_v6 }
 0x2bb   : > { %1564 = vmatpush.bf16.msrb.mxu0 %v1469_v24  ;;  %v1452_v18 = vmax.f32 %v1425_v59, 0.0  ;;  %v1440_v16 = vmax.f32 %v1418_v12, 0.0 }
 0x2bd   : > { %v1400_v4 = vpop.f32.mrf.mxu2  ;;  %1593 = vmatpush.bf16.msrb.mxu1 %v1470_v50 }
 0x2be   : > { %1996 = vmatmul.msk.bf16.vlgmr.msrb.gmra.mxu0 %vm1072_vm6, %v2936_v15  ;;  %v1401_v61 = vadd.f32 %v1400_v4, %v2903_v48 }
 0x2c0   : > { %2000 = vmatmul.msk.bf16.vlgmr.msrb.gmra.mxu1 %vm1072_vm6, %v2936_v15  ;;  %v1427_v10 = vpop.f32.mrf.mxu3  ;;  %v1459_v5 = vmax.f32 %v1401_v61, 0.0 }
 0x2c1   : > { %v1428_v28 = vadd.f32 %v1427_v10, %v2896_v62  ;;  %v1420_v62 = vadd.f32 %v2906_v27, %v2921_v21 }
 0x2c2   : > { %v1479_v13 = vpack.c.bf16 %v1459_v5, %v1455_v3 }
 0x2c3   : > { %v1444_v49 = vmax.f32 %v1420_v62, 0.0 }
 0x2c5   : > { %v1403_v31 = vpop.f32.mrf.mxu2 }
 0x2c6   : > { %v1404_v34 = vadd.f32 %v1403_v31, %v2892_v40 }
 0x2c8   : > { %v1429_v29 = vpop.f32.mrf.mxu3  ;;  %v1463_v63 = vmax.f32 %v1404_v34, 0.0 }
 0x2c9   : > { %v1430_v44 = vadd.f32 %v1429_v29, %v2903_v48  ;;  %v1456_v48 = vmax.f32 %v1428_v28, 0.0 }
 0x2cd   : > { %v1405_v52 = vpop.f32.mrf.mxu2 }
 0x2ce   : > { %v1406_v54 = vadd.f32 %v1405_v52, %v2890_v57  ;;  %1997 = vmatmul.msk.bf16.gmra.mxu0 %vm1072_vm6, %v2034_v55 }
 0x2d0   : > { %v1467_v58 = vmax.f32 %v1406_v54, 0.0  ;;  %2001 = vmatmul.msk.bf16.gmra.mxu1 %vm1072_vm6, %v2034_v55  ;;  %v1432_v17 = vpop.f32.mrf.mxu3  ;;  %v2992_v54 = vpop.permute.xlu2 %1522 }
 0x2d1   : > { %v1433_v22 = vadd.f32 %v1432_v17, %v2892_v40  ;;  %v1460_v40 = vmax.f32 %v1430_v44, 0.0  ;;  %v3015_v44 = vpop.permute.xlu0 %1502 }
 0x2d2   : > { %v1483_v36 = vpack.c.bf16 %v1467_v58, %v1463_v63 }
 0x2d3   : > { %v1464_v51 = vmax.f32 %v1433_v22, 0.0  ;;  %v1480_v14 = vpack.c.bf16 %v1460_v40, %v1456_v48 }
 0x2d4   : > { %1619 = vmatpush.bf16.msrb.mxu2 %v1483_v36 }
 0x2d8   : > { %1620 = vmatpush.bf16.msrb.mxu2 %v1479_v13  ;;  %v1434_v1 = vpop.f32.mrf.mxu3  ;;  %v3000_v5 = vpop.permute.xlu2 %1497 }
 0x2d9   : > { %v1435_v26 = vadd.f32 %v1434_v1, %v2890_v57  ;;  %v1423_v57 = vadd.f32 %v2925_v23, %v2900_v9  ;;  %v1472_v9 = vpack.c.bf16 %v1444_v49, %v1440_v16  ;;  %v2036_v23 = vld [vmem:[%s3114_s2 + $0x58] sm:$0xff] }
 0x2db   : > { %v1468_v30 = vmax.f32 %v1435_v26, 0.0  ;;  %v1448_v19 = vmax.f32 %v1423_v57, 0.0 }
 0x2dc   : > { %1621 = vmatpush.bf16.msrb.mxu2 %v1475_v53 }
 0x2dd   : > { %v1484_v20 = vpack.c.bf16 %v1468_v30, %v1464_v51  ;;  %v1476_v24 = vpack.c.bf16 %v1452_v18, %v1448_v19 }
 0x2de   : > { %1998 = vmatmul.msk.bf16.gmra.mxu0 %vm1072_vm6, %v2035_v7 }
 0x2df   : > { %1648 = vmatpush.bf16.msrb.mxu3 %v1484_v20 }
 0x2e0   : > { %1622 = vmatpush.bf16.msrb.mxu2 %v1471_v0  ;;  %2002 = vmatmul.msk.bf16.gmra.mxu1 %vm1072_vm6, %v2035_v7  ;;  %v3023_v18 = vpop.permute.xlu2 %1492 }
 0x2e3   : > { %2004 = vmatmul.msk.bf16.vlgmr.msrb.gmra.mxu2 %vm1072_vm6, %v2936_v15  ;;  %1649 = vmatpush.bf16.msrb.mxu3 %v1480_v14 }
 0x2e7   : > { %1650 = vmatpush.bf16.msrb.mxu3 %v1476_v24 }
 0x2eb   : > { %1651 = vmatpush.bf16.msrb.mxu3 %v1472_v9 }
 0x2ee   : > { %1999 = vmatmul.msk.bf16.gmra.mxu0 %vm1072_vm6, %v2036_v23  ;;  %2008 = vmatmul.msk.bf16.vlgmr.msrb.gmra.mxu3 %vm1072_vm6, %v2936_v15 }
 0x2f0   : > { %2003 = vmatmul.msk.bf16.gmra.mxu1 %vm1072_vm6, %v2036_v23 }
 0x2f3   : > { %2005 = vmatmul.msk.bf16.gmra.mxu2 %vm1072_vm6, %v2034_v55 }
 0x2fe   : > { %2009 = vmatmul.msk.bf16.gmra.mxu3 %vm1072_vm6, %v2034_v55  ;;  %v2994_v55 = vpop.permute.xlu1 %1517 }
 0x303   : > { %2006 = vmatmul.msk.bf16.gmra.mxu2 %vm1072_vm6, %v2035_v7 }
 0x306   : > { %v3002_v36 = vpop.permute.xlu1 %1512 }
 0x30e   : > { %2010 = vmatmul.msk.bf16.gmra.mxu3 %vm1072_vm6, %v2035_v7  ;;  %v3027_v9 = vpop.permute.xlu1 %1487 }
 0x313   : > { %2007 = vmatmul.msk.bf16.gmra.mxu2 %vm1072_vm6, %v2036_v23 }
 0x31e   : > { %2011 = vmatmul.msk.bf16.gmra.mxu3 %vm1072_vm6, %v2036_v23 }
 0x33b   : > { %v1566_v42 = vpop.f32.mrf.mxu0 }
 0x33d   : > { %v1595_v27 = vpop.f32.mrf.mxu1 }
 0x343   : > { %v1568_v21 = vpop.f32.mrf.mxu0 }
 0x344   : > { %v1569_v49 = vadd.f32 %v1568_v21, %v3023_v18 }
 0x345   : > { %v1597_v6 = vpop.f32.mrf.mxu1 }
 0x346   : > { %v1598_v23 = vadd.f32 %v1597_v6, %v3023_v18 }
 0x34b   : > { %v1571_v50 = vpop.f32.mrf.mxu0 }
 0x34c   : > { %v1572_v57 = vadd.f32 %v1571_v50, %v3000_v5 }
 0x34d   : > { %v1600_v4 = vpop.f32.mrf.mxu1 }
 0x34e   : > { %v1601_v14 = vadd.f32 %v1600_v4, %v3000_v5 }
 0x350   : > { %v1682_v4 = vmax.f32 %v1601_v14, 0.0 }
 0x353   : > { %v1573_v15 = vpop.f32.mrf.mxu0 }
 0x354   : > { %v1574_v28 = vadd.f32 %v1573_v15, %v3015_v44 }
 0x355   : > { %v1602_v10 = vpop.f32.mrf.mxu1 }
 0x356   : > { %v1603_v59 = vadd.f32 %v1602_v10, %v3015_v44  ;;  %v1685_v24 = vmax.f32 %v1574_v28, 0.0  ;;  %v1567_v10 = vadd.f32 %v1566_v42, %v3027_v9  ;;  %v314_v42 = vld [vmem:[%s3116_s4] sm:$0xf] }
 0x358   : > { %v1686_v50 = vmax.f32 %v1603_v59, 0.0 }
 0x35a   : > { %v1710_v21 = vpack.c.bf16 %v1686_v50, %v1682_v4 }
 0x35b   : > { %v1576_v31 = vpop.f32.mrf.mxu0 }
 0x35c   : > { %v1577_v22 = vadd.f32 %v1576_v31, %v2998_v11  ;;  %v1681_v31 = vmax.f32 %v1572_v57, 0.0 }
 0x35d   : > { %v1605_v29 = vpop.f32.mrf.mxu1 }
 0x35e   : > { %v1606_v26 = vadd.f32 %v1605_v29, %v2998_v11  ;;  %v1689_v48 = vmax.f32 %v1577_v22, 0.0  ;;  %v1596_v29 = vadd.f32 %v1595_v27, %v3027_v9 }
 0x360   : > { %v1690_v12 = vmax.f32 %v1606_v26, 0.0 }
 0x363   : > { %v1578_v52 = vpop.f32.mrf.mxu0 }
 0x364   : > { %v1579_v13 = vadd.f32 %v1578_v52, %v3002_v36  ;;  %v1677_v52 = vmax.f32 %v1569_v49, 0.0 }
 0x365   : > { %v1607_v61 = vpop.f32.mrf.mxu1 }
 0x366   : > { %v2990_v34 = vpop.f32.mrf.mxu2  ;;  %v1608_v35 = vadd.f32 %v1607_v61, %v3002_v36  ;;  %v1693_v51 = vmax.f32 %v1579_v13, 0.0  ;;  %v1709_v61 = vpack.c.bf16 %v1685_v24, %v1681_v31 }
 0x367   : > { %v1625_v49 = vadd.f32 %v2990_v34, %v3027_v9 }
 0x368   : > { %v1694_v40 = vmax.f32 %v1608_v35, 0.0  ;;  %v1713_v16 = vpack.c.bf16 %v1693_v51, %v1689_v48 }
 0x369   : > { %v1675_v50 = vmax.f32 %v1625_v49, 0.0 }
 0x36a   : > { %v1714_v15 = vpack.c.bf16 %v1694_v40, %v1690_v12 }
 0x36b   : > { %v1581_v63 = vpop.f32.mrf.mxu0 }
 0x36c   : > { %v1582_v3 = vadd.f32 %v1581_v63, %v2994_v55  ;;  %v1678_v63 = vmax.f32 %v1598_v23, 0.0 }
 0x36d   : > { %v1610_v58 = vpop.f32.mrf.mxu1 }
 0x36e   : > { %v2996_v39 = vpop.f32.mrf.mxu2  ;;  %v1611_v32 = vadd.f32 %v1610_v58, %v2994_v55  ;;  %v1697_v25 = vmax.f32 %v1582_v3, 0.0  ;;  %v1673_v58 = vmax.f32 %v1567_v10, 0.0 }
 0x36f   : > { %v1627_v48 = vadd.f32 %v2996_v39, %v3023_v18 }
 0x370   : > { %v1698_v7 = vmax.f32 %v1611_v32, 0.0  ;;  %v1674_v32 = vmax.f32 %v1596_v29, 0.0  ;;  %v1705_v6 = vpack.c.bf16 %v1677_v52, %v1673_v58 }
 0x371   : > { %v3004_v56 = vpop.f32.mrf.mxu3 }
 0x372   : > { %v1706_v13 = vpack.c.bf16 %v1678_v63, %v1674_v32 }
 0x373   : > { %v1583_v60 = vpop.f32.mrf.mxu0 }
 0x374   : > { %v1584_v38 = vadd.f32 %v1583_v60, %v2992_v54 }
 0x375   : > { %v1612_v37 = vpop.f32.mrf.mxu1 }
 0x376   : > { %v3007_v17 = vpop.f32.mrf.mxu2  ;;  %v1613_v53 = vadd.f32 %v1612_v37, %v2992_v54  ;;  %v1701_v1 = vmax.f32 %v1584_v38, 0.0 }
 0x377   : > { %v1630_v40 = vadd.f32 %v3007_v17, %v3000_v5 }
 0x378   : > { %v1702_v0 = vmax.f32 %v1613_v53, 0.0  ;;  %v1717_v30 = vpack.c.bf16 %v1701_v1, %v1697_v25 }
 0x379   : > { %v3021_v62 = vpop.f32.mrf.mxu3  ;;  %v1683_v24 = vmax.f32 %v1630_v40, 0.0 }
 0x37a   : > { %v1718_v20 = vpack.c.bf16 %v1702_v0, %v1698_v7  ;;  %1733 = vmatpush.bf16.msra.mxu0 %v1717_v30 }
 0x37c   : > { %1746 = vmatpush.bf16.msra.mxu1 %v1718_v20 }
 0x37e   : > { %v1631_v19 = vpop.f32.mrf.mxu2  ;;  %1734 = vmatpush.bf16.msra.mxu0 %v1713_v16  ;;  %v1679_v16 = vmax.f32 %v1627_v48, 0.0 }
 0x37f   : > { %v1632_v51 = vadd.f32 %v1631_v19, %v3015_v44 }
 0x380   : > { %1747 = vmatpush.bf16.msra.mxu1 %v1714_v15  ;;  %v1707_v31 = vpack.c.bf16 %v1679_v16, %v1675_v50 }
 0x381   : > { %v1658_v3 = vpop.f32.mrf.mxu3  ;;  %v1687_v14 = vmax.f32 %v1632_v51, 0.0 }
 0x382   : > { %1735 = vmatpush.bf16.msra.mxu0 %v1709_v61  ;;  %v1659_v63 = vadd.f32 %v1658_v3, %v3000_v5  ;;  %v700_v3 = vrot.slane %v2418_v8, 7 }
 0x383   : > { %v1711_v19 = vpack.c.bf16 %v1687_v14, %v1683_v24 }
 0x384   : > { %1748 = vmatpush.bf16.msra.mxu1 %v1710_v21  ;;  %v1654_v21 = vadd.f32 %v3004_v56, %v3027_v9  ;;  %v1684_v58 = vmax.f32 %v1659_v63, 0.0  ;;  %v709_v56 = vsel %vm708_vm4, %v2415_v43, %v700_v3  ;;  %v702_v43 = vrot.slane %v2557_v45, 7 }
 0x386   : > { %v1634_v60 = vpop.f32.mrf.mxu2  ;;  %1736 = vmatpush.bf16.msra.mxu0 %v1705_v6 }
 0x387   : > { %v1635_v7 = vadd.f32 %v1634_v60, %v2998_v11  ;;  %v1676_v60 = vmax.f32 %v1654_v21, 0.0 }
 0x388   : > { %1749 = vmatpush.bf16.msra.mxu1 %v1706_v13 }
 0x389   : > { %2012 = vmatmul.msk.bf16.vlgmr.msra.gmra.mxu0 %vm1072_vm6, %v314_v42  ;;  %v1660_v27 = vpop.f32.mrf.mxu3  ;;  %v1691_v20 = vmax.f32 %v1635_v7, 0.0 }
 0x38a   : > { %v1661_v34 = vadd.f32 %v1660_v27, %v3015_v44 }
 0x38b   : > { %2013 = vmatmul.msk.bf16.vlgmr.msra.gmra.mxu1 %vm1072_vm6, %v314_v42 }
 0x38e   : > { %v1636_v38 = vpop.f32.mrf.mxu2 }
 0x38f   : > { %v1637_v1 = vadd.f32 %v1636_v38, %v3002_v36 }
 0x391   : > { %v1663_v37 = vpop.f32.mrf.mxu3  ;;  %v1695_v30 = vmax.f32 %v1637_v1, 0.0 }
 0x392   : > { %v1664_v39 = vadd.f32 %v1663_v37, %v2998_v11 }
 0x393   : > { %v1715_v12 = vpack.c.bf16 %v1695_v30, %v1691_v20 }
 0x396   : > { %v1639_v35 = vpop.f32.mrf.mxu2 }
 0x397   : > { %v1640_v22 = vadd.f32 %v1639_v35, %v2994_v55 }
 0x399   : > { %v1665_v53 = vpop.f32.mrf.mxu3  ;;  %v1699_v0 = vmax.f32 %v1640_v22, 0.0  ;;  %v711_v22 = vsel %vm708_vm4, %v2548_v33, %v702_v43 }
 0x39a   : > { %v1666_v17 = vadd.f32 %v1665_v53, %v3002_v36  ;;  %v1688_v36 = vmax.f32 %v1661_v34, 0.0 }
 0x39c   : > { %v1696_v52 = vmax.f32 %v1666_v17, 0.0  ;;  %v1712_v32 = vpack.c.bf16 %v1688_v36, %v1684_v58 }
 0x39e   : > { %v1641_v25 = vpop.f32.mrf.mxu2 }
 0x39f   : > { %v1642_v26 = vadd.f32 %v1641_v25, %v2992_v54 }
 0x3a1   : > { %v1703_v28 = vmax.f32 %v1642_v26, 0.0  ;;  %v1668_v57 = vpop.f32.mrf.mxu3 }
 0x3a2   : > { %v1669_v23 = vadd.f32 %v1668_v57, %v2994_v55  ;;  %v1692_v55 = vmax.f32 %v1664_v39, 0.0 }
 0x3a3   : > { %v1719_v59 = vpack.c.bf16 %v1703_v28, %v1699_v0  ;;  %v703_v0 = vrot.slane %v2617_v47, 7 }
 0x3a4   : > { %v1700_v29 = vmax.f32 %v1669_v23, 0.0  ;;  %v1716_v11 = vpack.c.bf16 %v1696_v52, %v1692_v55 }
 0x3a5   : > { %1759 = vmatpush.bf16.msra.mxu2 %v1719_v59  ;;  %v712_v45 = vsel %vm708_vm4, %v2615_v46, %v703_v0 }
 0x3a9   : > { %1760 = vmatpush.bf16.msra.mxu2 %v1715_v12  ;;  %v1670_v15 = vpop.f32.mrf.mxu3 }
 0x3aa   : > { %v1671_v10 = vadd.f32 %v1670_v15, %v2992_v54  ;;  %v1656_v54 = vadd.f32 %v3021_v62, %v3023_v18  ;;  %v701_v62 = vrot.slane %v2453_v2, 7  ;;  %v1724_v18 = vpop.permute.xlu0 %1723 }
 0x3ac   : > { %v1704_v4 = vmax.f32 %v1671_v10, 0.0  ;;  %v1680_v44 = vmax.f32 %v1656_v54, 0.0  ;;  %v710_v13 = vsel %vm708_vm4, %v2451_v41, %v701_v62 }
 0x3ad   : > { %1761 = vmatpush.bf16.msra.mxu2 %v1711_v19 }
 0x3ae   : > { %v1720_v61 = vpack.c.bf16 %v1704_v4, %v1700_v29  ;;  %v1708_v5 = vpack.c.bf16 %v1680_v44, %v1676_v60 }
 0x3b0   : > { %1772 = vmatpush.bf16.msra.mxu3 %v1720_v61 }
 0x3b1   : > { %1762 = vmatpush.bf16.msra.mxu2 %v1707_v31 }
 0x3b4   : > { %2014 = vmatmul.msk.bf16.vlgmr.msra.gmra.mxu2 %vm1072_vm6, %v314_v42  ;;  %1773 = vmatpush.bf16.msra.mxu3 %v1716_v11 }
 0x3b8   : > { %1774 = vmatpush.bf16.msra.mxu3 %v1712_v32 }
 0x3bc   : > { %1775 = vmatpush.bf16.msra.mxu3 %v1708_v5 }
 0x3bf   : > { %2015 = vmatmul.msk.bf16.vlgmr.msra.gmra.mxu3 %vm1072_vm6, %v314_v42 }
 0x406   : > { %v1738_v9 = vpop.f32.mrf.mxu0 }
 0x407   : > { %v1739_v6 = vadd.f32 %v1738_v9, %v1724_v18 }
 0x408   : > { %v1751_v27 = vpop.f32.mrf.mxu1 }
 0x409   : > { %v1752_v38 = vadd.f32 %v1751_v27, %v1724_v18  ;;  %v1781_v37 = vmul.f32 %v1739_v6, %v709_v56 }
 0x40b   : > { %v1782_v42 = vmul.f32 %v1752_v38, %v710_v13  ;;  %v1785_v8 = vsel %vm769_vm5, %v1781_v37, %v1739_v6 }
 0x40c   : > { %1789 = vst [vmem:[%s245_s10] sm:$0xff] %v1785_v8 }
 0x40d   : > { %v1786_v2 = vsel %vm769_vm5, %v1782_v42, %v1752_v38 }
 0x40e   : > { %1790 = vst [vmem:[%s245_s10 + $0x8] sm:$0xff] %v1786_v2  ;;  %v1740_v35 = vpop.f32.mrf.mxu0 }
 0x410   : > { %v1753_v53 = vpop.f32.mrf.mxu1 }
 0x437   : > { %v1764_v41 = vpop.f32.mrf.mxu2 }
 0x438   : > { %v1765_v25 = vadd.f32 %v1764_v41, %v1724_v18 }
 0x43a   : > { %v1783_v1 = vmul.f32 %v1765_v25, %v711_v22 }
 0x43c   : > { %v1787_v26 = vsel %vm769_vm5, %v1783_v1, %v1765_v25 }
 0x43d   : > { %1791 = vst [vmem:[%s245_s10 + $0x10] sm:$0xff] %v1787_v26 }
 0x43f   : > { %v1766_v7 = vpop.f32.mrf.mxu2 }
 0x442   : > { %v1777_v33 = vpop.f32.mrf.mxu3 }
 0x443   : > { %v1778_v28 = vadd.f32 %v1777_v33, %v1724_v18 }
 0x445   : > { %v1784_v51 = vmul.f32 %v1778_v28, %v712_v45 }
 0x447   : > { %v1788_v30 = vsel %vm769_vm5, %v1784_v51, %v1778_v28 }
 0x448   : > { %1792 = vst [vmem:[%s245_s10 + $0x18] sm:$0xff] %v1788_v30 }
 0x449   : > { %2132 = shalt.err (!%p2129_p3)
}
 0x44a   : > { %2038 = dma.vmem_to_hbm [thread:$0]  (%p2243_p5), %s1808_s15, 512, %s1810_s16, %s1794_s25   ;;  %v1779_v46 = vpop.f32.mrf.mxu3 }
 0x44b PF: > { %p2044_p4 = scmp.ge.s32.totalorder %s2167_s24, 2  ;;  %s1821_s29 = sand.u32 1, %s2155_s21  }
 0x44c   : > { %s1822_s10 = scalar_lea.sflag [#allocation3], %s1821_s29 }
 0x44d   : > { %p2041_p7 = pnand %p2044_p4, %p2247_p6 }
 0x44f   : > { %p2042_p8 = pneg %p2041_p7 }
 0x451   : > { %2150 = dma.done.wait (%p2042_p8), %s1822_s10, 512  }
 0x452   : > { %2152 = vsyncadd (%p2042_p8), %s1822_s10, 4294966784  ;;  %p16_p9 = scmp.ge.s32.totalorder %s2230_s27, 4   ;;  %s3137_s21 = smov %s2159_s22 }
 0x453   : > { %s3138_s22 = smov %s2163_s23  ;;  %s3139_s23 = smov %s2241_s30 }
 0x454   : > { %s3140_s24 = smov %s2230_s27  ;;  %18 = sbr.rel (!%p16_p9) target bundleno = 3 (0x3), region = 79 }
 0x459   :  { %1828 = vsyncpa [#allocation3], 1 }
 0x45a   :  { %1830 = vsyncpa [#allocation3 + $0x1], 1 }

</bundles_post_ra>
